<compile_context>
chip_gen: v5e
topology: v5e:2x2
jax: 0.10.0
libtpu: 0.0.40
codegen_flags: <defaults>
</compile_context>

<pallas_src>
import math

import jax
import jax.numpy as jnp
from jax import lax
from jax.experimental import pallas as pl
from jax.experimental.pallas import tpu as pltpu


def _round_up(x, m):
    return ((x + m - 1) // m) * m


def _pad_axes(a, targets):
    """Zero-pad `a` so that axis -> size in `targets` is met (grow only)."""
    widths = [(0, 0)] * a.ndim
    need = False
    for ax, tgt in targets.items():
        cur = a.shape[ax]
        if tgt > cur:
            widths[ax] = (0, tgt - cur)
            need = True
    return jnp.pad(a, widths) if need else a


def _vmem_limit_bytes():
    """Generation-aware VMEM limit (v7x: 64 MiB, v5e/v6e: 128 MiB)."""
    cap = 64 * 1024 * 1024
    try:
        cap = int(getattr(pltpu.get_tpu_info(), "vmem_capacity_bytes", cap))
    except Exception:
        pass
    return max(32 * 1024 * 1024, cap - (8 << 20))


# ---------------------------------------------------------------------------
# Stage 1: Q / K_eff / V_eff projections fused with the abs_encoding addition.
#   q      = x @ (qw * scale) + qb * scale            (scale pre-folded)
#   k_eff  = x @ kw + kb + abs    -> stored transposed as [H, S]
#   v_eff  = x @ vw + vb + abs
# ---------------------------------------------------------------------------
def _qkv_kernel(x_ref, abs_ref, qw_ref, qb_ref, kw_ref, kb_ref, vw_ref, vb_ref,
                q_ref, kt_ref, v_ref):
    x_bf = x_ref[0].astype(jnp.bfloat16)                               # [TS, Hp]
    ab = abs_ref[0].astype(jnp.float32)                                # [TS, Hp]
    q = jnp.dot(x_bf, qw_ref[...], preferred_element_type=jnp.float32) + qb_ref[...]
    k = jnp.dot(x_bf, kw_ref[...], preferred_element_type=jnp.float32) + kb_ref[...] + ab
    v = jnp.dot(x_bf, vw_ref[...], preferred_element_type=jnp.float32) + vb_ref[...] + ab
    q_ref[0] = q.astype(q_ref.dtype)
    kt_ref[0] = k.T.astype(kt_ref.dtype)      # one transpose per tile, once total
    v_ref[0] = v.astype(v_ref.dtype)


# ---------------------------------------------------------------------------
# Stage 2: flash-style attention over KV tiles + dense_1 + LN + FFN + LN.
# ---------------------------------------------------------------------------
def _make_attn_ffn_kernel(*, H, Hp, S, TQ, TK, need_key_mask, eps=1e-5):
    inv_h = 1.0 / H

    def layernorm(y, gamma, beta):
        # Two-pass (centered) LN over the real H columns; padded columns of y
        # are zero on input and gamma/beta are zero-padded, so output pad = 0.
        mean = jnp.sum(y, axis=-1, keepdims=True) * inv_h
        yc = y - mean
        sq = yc * yc
        if Hp != H:
            col = lax.broadcasted_iota(jnp.int32, (1, Hp), 1)
            sq = jnp.where(col < H, sq, 0.0)
        var = jnp.sum(sq, axis=-1, keepdims=True) * inv_h
        return yc * lax.rsqrt(var + eps) * gamma + beta

    def kernel(x_ref, q_ref, kt_ref, v_ref,
               d1w_ref, d1b_ref, lng_ref, lnb_ref,
               d2w_ref, d2b_ref, d3w_ref, d3b_ref,
               o_ref, m_sc, l_sc, acc_sc):
        kv = pl.program_id(2)
        n_kv = pl.num_programs(2)

        @pl.when(kv == 0)
        def _():
            m_sc[...] = jnp.full(m_sc.shape, -jnp.inf, dtype=m_sc.dtype)
            l_sc[...] = jnp.zeros(l_sc.shape, dtype=l_sc.dtype)
            acc_sc[...] = jnp.zeros(acc_sc.shape, dtype=acc_sc.dtype)

        q = q_ref[0]                    # [TQ, Hp] bf16 (attention scale folded in)
        kt = kt_ref[0]                  # [Hp, TK] bf16 (K + abs, pre-transposed)
        v = v_ref[0]                    # [TK, Hp] bf16 (V + abs)

        s = jnp.dot(q, kt, preferred_element_type=jnp.float32)        # [TQ, TK]
        if need_key_mask:
            key_pos = kv * TK + lax.broadcasted_iota(jnp.int32, (TQ, TK), 1)
            s = jnp.where(key_pos < S, s, -1e30)

        # online softmax update
        m_new = jnp.maximum(m_sc[...], jnp.max(s, axis=-1, keepdims=True))
        alpha = jnp.exp(m_sc[...] - m_new)
        p = jnp.exp(s - m_new)
        l_sc[...] = alpha * l_sc[...] + jnp.sum(p, axis=-1, keepdims=True)
        acc_sc[...] = alpha * acc_sc[...] + jnp.dot(
            p.astype(jnp.bfloat16), v, preferred_element_type=jnp.float32)
        m_sc[...] = m_new

        @pl.when(kv == n_kv - 1)
        def _():
            # finalize attention, then dense_1 + residual + LN + FFN + residual + LN
            attn = acc_sc[...] * pl.reciprocal(l_sc[...], approx=True)  # [TQ, Hp]
            x = x_ref[0].astype(jnp.float32)
            gamma = lng_ref[...]
            beta = lnb_ref[...]

            t1 = jnp.dot(attn.astype(jnp.bfloat16), d1w_ref[...],
                         preferred_element_type=jnp.float32) + d1b_ref[...]
            a2 = layernorm(t1 + x, gamma, beta)

            h = jnp.dot(a2.astype(jnp.bfloat16), d2w_ref[...],
                        preferred_element_type=jnp.float32) + d2b_ref[...]
            h = jax.nn.gelu(h, approximate=False)
            h = jnp.dot(h.astype(jnp.bfloat16), d3w_ref[...],
                        preferred_element_type=jnp.float32) + d3b_ref[...]

            o_ref[0] = layernorm(h + a2, gamma, beta).astype(o_ref.dtype)

    return kernel


def transformer_layer(abs_encoding, hidden_states, params, *, num_heads):
    x = hidden_states
    B, S, H = x.shape
    I = params["d2w"].shape[1]
    head_size = H // num_heads
    scale = 1.0 / math.sqrt(head_size)

    f32 = jnp.float32
    cdt = jnp.bfloat16  # MXU operand dtype; accumulation stays f32.

    # -------- lane / sublane padding (lane-dense stores, full MXU tiles) ------
    Hp = _round_up(H, 128)
    Ip = _round_up(I, 128)
    if S <= 256:
        Sp = _round_up(S, 8)
        TQ = Sp          # single query tile, single kv tile
        TK = Sp
    else:
        Sp = _round_up(S, 128)
        TQ = 256 if Sp % 256 == 0 else 128   # fill the 256-wide MXU on v6e/v7x
        TK = TQ
    n_s = Sp // TQ       # stage-1 row tiles
    n_q = Sp // TQ       # stage-2 query tiles
    n_kv = Sp // TK      # stage-2 kv tiles (flash loop)

    xp = _pad_axes(x.astype(f32), {1: Sp, 2: Hp})
    ap = _pad_axes(abs_encoding.astype(f32), {1: Sp, 2: Hp})

    def pad2(w, r, c):
        return _pad_axes(w.astype(f32), {0: r, 1: c})

    # attention scale folded into the query projection (free); zero-padding of
    # weights/biases/LN params keeps padded columns exactly zero end-to-end.
    qw = pad2(params["qw"] * scale, Hp, Hp).astype(cdt)
    qb = pad2(params["qb"] * scale, 1, Hp)
    kw = pad2(params["kw"], Hp, Hp).astype(cdt)
    kb = pad2(params["kb"], 1, Hp)
    vw = pad2(params["vw"], Hp, Hp).astype(cdt)
    vb = pad2(params["vb"], 1, Hp)
    d1w = pad2(params["d1w"], Hp, Hp).astype(cdt)
    d1b = pad2(params["d1b"], 1, Hp)
    d2w = pad2(params["d2w"], Hp, Ip).astype(cdt)
    d2b = pad2(params["d2b"], 1, Ip)
    d3w = pad2(params["d3w"], Ip, Hp).astype(cdt)
    d3b = pad2(params["d3b"], 1, Hp)
    ln_g = pad2(params["ln_g"], 1, Hp)
    ln_b = pad2(params["ln_b"], 1, Hp)

    vmem_limit = _vmem_limit_bytes()

    def _run(use_buffered):
        # Constant-index operands: single buffer (their block never changes).
        def const_spec(shape):
            im = lambda *_: (0, 0)
            if use_buffered:
                return pl.BlockSpec(shape, im, pipeline_mode=pl.Buffered(1))
            return pl.BlockSpec(shape, im)

        # ----------------------- stage 1: q / k_eff^T / v_eff -----------------
        row_tile = lambda: pl.BlockSpec((1, TQ, Hp), lambda b, s: (b, s, 0))
        kt_out = pl.BlockSpec((1, Hp, TQ), lambda b, s: (b, 0, s))

        qkv_cost = pl.CostEstimate(
            flops=6 * B * Sp * Hp * Hp,
            transcendentals=0,
            bytes_accessed=(2 * B * Sp * Hp * 4          # x + abs in
                            + 3 * Hp * Hp * 2            # qw, kw, vw (once)
                            + 3 * B * Sp * Hp * 2))      # q, kt, v out

        q_s, kt_s, v_s = pl.pallas_call(
            _qkv_kernel,
            out_shape=(jax.ShapeDtypeStruct((B, Sp, Hp), cdt),
                       jax.ShapeDtypeStruct((B, Hp, Sp), cdt),
                       jax.ShapeDtypeStruct((B, Sp, Hp), cdt)),
            grid_spec=pltpu.PrefetchScalarGridSpec(
                num_scalar_prefetch=0,
                grid=(B, n_s),
                in_specs=[
                    row_tile(), row_tile(),
                    const_spec((Hp, Hp)), const_spec((1, Hp)),   # query w, b (pre-scaled)
                    const_spec((Hp, Hp)), const_spec((1, Hp)),   # key   w, b
                    const_spec((Hp, Hp)), const_spec((1, Hp)),   # value w, b
                ],
                out_specs=(row_tile(), kt_out, row_tile()),
            ),
            compiler_params=pltpu.CompilerParams(
                dimension_semantics=("parallel", "parallel"),
                vmem_limit_bytes=vmem_limit),
            cost_estimate=qkv_cost,
        )(xp, ap, qw, qb, kw, kb, vw, vb)

        # --------------------- stage 2: flash attention + FFN -----------------
        x_tile = pl.BlockSpec((1, TQ, Hp), lambda b, t, k: (b, t, 0))
        q_tile = pl.BlockSpec((1, TQ, Hp), lambda b, t, k: (b, t, 0))
        kt_blk = pl.BlockSpec((1, Hp, TK), lambda b, t, k: (b, 0, k))
        v_blk = pl.BlockSpec((1, TK, Hp), lambda b, t, k: (b, k, 0))
        o_tile = pl.BlockSpec((1, TQ, Hp), lambda b, t, k: (b, t, 0))

        attn_cost = pl.CostEstimate(
            flops=2 * B * Sp * (2 * Sp * Hp + Hp * Hp + 2 * Hp * Ip),
            transcendentals=B * Sp * (Sp + Ip),
            bytes_accessed=(B * Sp * Hp * 4                  # x in
                            + B * Sp * Hp * 2                # q in
                            + 2 * B * n_q * Sp * Hp * 2      # kt/v streamed per q tile
                            + (Hp * Hp + 2 * Hp * Ip) * 2    # weights (fetched once)
                            + B * Sp * Hp * 4))              # out

        kernel2 = _make_attn_ffn_kernel(
            H=H, Hp=Hp, S=S, TQ=TQ, TK=TK, need_key_mask=(Sp != S))

        out_p = pl.pallas_call(
            kernel2,
            out_shape=jax.ShapeDtypeStruct((B, Sp, Hp), x.dtype),
            grid_spec=pltpu.PrefetchScalarGridSpec(
                num_scalar_prefetch=0,
                grid=(B, n_q, n_kv),
                in_specs=[
                    x_tile, q_tile, kt_blk, v_blk,
                    const_spec((Hp, Hp)), const_spec((1, Hp)),   # dense_1 w, b
                    const_spec((1, Hp)), const_spec((1, Hp)),    # LayerNorm gamma, beta
                    const_spec((Hp, Ip)), const_spec((1, Ip)),   # dense_2 w, b
                    const_spec((Ip, Hp)), const_spec((1, Hp)),   # dense_3 w, b
                ],
                out_specs=o_tile,
                scratch_shapes=[
                    pltpu.VMEM((TQ, 1), jnp.float32),     # running max m
                    pltpu.VMEM((TQ, 1), jnp.float32),     # running denom l
                    pltpu.VMEM((TQ, Hp), jnp.float32),    # attention accumulator
                ],
            ),
            compiler_params=pltpu.CompilerParams(
                dimension_semantics=("parallel", "parallel", "arbitrary"),
                vmem_limit_bytes=vmem_limit),
            cost_estimate=attn_cost,
        )(xp, q_s, kt_s, v_s,
          d1w, d1b, ln_g, ln_b, d2w, d2b, d3w, d3b)
        return out_p

    try:
        out_p = _run(use_buffered=True)
    except Exception:
        # Fallback for environments where pipeline_mode=pl.Buffered(1) on
        # constant-index operands is not accepted.
        out_p = _run(use_buffered=False)

    return out_p[:, :S, :H]


# ---------------------------------------------------------------------------
# Pure-JAX f32 reference matching the PyTorch forward exactly.
# ---------------------------------------------------------------------------
def _reference(abs_enc, x, p, num_heads):
    head_size = x.shape[-1] // num_heads
    xf = x.astype(jnp.float32)
    a = abs_enc.astype(jnp.float32)
    q = xf @ p["qw"] + p["qb"]
    k = xf @ p["kw"] + p["kb"]
    v = xf @ p["vw"] + p["vb"]
    s = jnp.einsum("bsh,bth->bst", q, k) + jnp.einsum("bsh,bth->bst", q, a)
    s = s / math.sqrt(head_size)
    probs = jax.nn.softmax(s, axis=-1)
    attn = jnp.einsum("bst,bth->bsh", probs, v) + jnp.einsum("bst,bth->bsh", probs, a)
    t1 = attn @ p["d1w"] + p["d1b"]

    def ln(y):
        m = jnp.mean(y, -1, keepdims=True)
        var = jnp.mean((y - m) ** 2, -1, keepdims=True)
        return (y - m) * lax.rsqrt(var + 1e-5) * p["ln_g"] + p["ln_b"]

    a2 = ln(t1 + xf)
    h = jax.nn.gelu(a2 @ p["d2w"] + p["d2b"], approximate=False)
    h = h @ p["d3w"] + p["d3b"]
    return ln(h + a2)


def _make_params(key, H, I):
    keys = jax.random.split(key, 12)
    sc = 0.05
    return {
        "qw": jax.random.normal(keys[0], (H, H), jnp.float32) * sc,
        "qb": jax.random.normal(keys[1], (1, H), jnp.float32) * sc,
        "kw": jax.random.normal(keys[2], (H, H), jnp.float32) * sc,
        "kb": jax.random.normal(keys[3], (1, H), jnp.float32) * sc,
        "vw": jax.random.normal(keys[4], (H, H), jnp.float32) * sc,
        "vb": jax.random.normal(keys[5], (1, H), jnp.float32) * sc,
        "d1w": jax.random.normal(keys[6], (H, H), jnp.float32) * sc,
        "d1b": jax.random.normal(keys[7], (1, H), jnp.float32) * sc,
        "ln_g": jnp.ones((1, H), jnp.float32),
        "ln_b": jnp.zeros((1, H), jnp.float32),
        "d2w": jax.random.normal(keys[8], (H, I), jnp.float32) * sc,
        "d2b": jax.random.normal(keys[9], (1, I), jnp.float32) * sc,
        "d3w": jax.random.normal(keys[10], (I, H), jnp.float32) * sc,
        "d3b": jax.random.normal(keys[11], (1, H), jnp.float32) * sc,
    }


if __name__ == "__main__":
    root = jax.random.PRNGKey(0)
    k_p1, k_x1, k_a1, k_p2, k_x2, k_a2 = jax.random.split(root, 6)

    # ---- test 1: small shapes (single-tile path, H/I below lane width) ----
    B, S, H, I, num_heads = 2, 8, 32, 64, 4
    params = _make_params(k_p1, H, I)
    x = jax.random.normal(k_x1, (B, S, H), jnp.float32)
    abs_encoding = jax.random.normal(k_a1, (B, S, H), jnp.float32) * 0.1

    out = jax.block_until_ready(
        transformer_layer(abs_encoding, x, params, num_heads=num_heads))
    ref = _reference(abs_encoding, x, params, num_heads)
    assert out.shape == (B, S, H)
    assert jnp.allclose(out, ref, atol=3e-2, rtol=3e-2), "mismatch vs reference (small)"

    # ---- test 2: tiled flash path (S > 256, S padding + key masking) ----
    B2, S2, H2, I2, nh2 = 1, 300, 64, 96, 4
    params2 = _make_params(k_p2, H2, I2)
    x2 = jax.random.normal(k_x2, (B2, S2, H2), jnp.float32)
    abs2 = jax.random.normal(k_a2, (B2, S2, H2), jnp.float32) * 0.1

    out2 = jax.block_until_ready(
        transformer_layer(abs2, x2, params2, num_heads=nh2))
    ref2 = _reference(abs2, x2, params2, nh2)
    assert out2.shape == (B2, S2, H2)
    assert jnp.allclose(out2, ref2, atol=5e-2, rtol=5e-2), "mismatch vs reference (tiled)"

    print("KERNEL_OK")
</pallas_src>

<mosaic_0001>
module attributes {stable_mosaic.version = 11 : i64} {
  func.func @_qkv_kernel(%arg0: i32, %arg1: i32, %arg2: memref<1x8x128xf32, #tpu.memory_space<vmem>>, %arg3: memref<1x8x128xf32, #tpu.memory_space<vmem>>, %arg4: memref<128x128xbf16, #tpu.memory_space<vmem>>, %arg5: memref<1x128xf32, #tpu.memory_space<vmem>>, %arg6: memref<128x128xbf16, #tpu.memory_space<vmem>>, %arg7: memref<1x128xf32, #tpu.memory_space<vmem>>, %arg8: memref<128x128xbf16, #tpu.memory_space<vmem>>, %arg9: memref<1x128xf32, #tpu.memory_space<vmem>>, %arg10: memref<1x8x128xbf16, #tpu.memory_space<vmem>>, %arg11: memref<1x128x8xbf16, #tpu.memory_space<vmem>>, %arg12: memref<1x8x128xbf16, #tpu.memory_space<vmem>>) attributes {dimension_semantics = [#tpu.dimension_semantics<parallel>, #tpu.dimension_semantics<parallel>], iteration_bounds = array<i64: 2, 1>, scalar_prefetch = 0 : i64, scratch_operands = 0 : i64, tpu.core_type = #tpu.core_type<tc>, window_params = [{transform_indices = @transform_0, window_bounds = array<i64: 1, 8, 128>}, {transform_indices = @transform_1, window_bounds = array<i64: 1, 8, 128>}, {pipeline_mode = #tpu.pipeline_mode<synchronous>, transform_indices = @transform_2, window_bounds = array<i64: 128, 128>}, {pipeline_mode = #tpu.pipeline_mode<synchronous>, transform_indices = @transform_3, window_bounds = array<i64: 1, 128>}, {pipeline_mode = #tpu.pipeline_mode<synchronous>, transform_indices = @transform_4, window_bounds = array<i64: 128, 128>}, {pipeline_mode = #tpu.pipeline_mode<synchronous>, transform_indices = @transform_5, window_bounds = array<i64: 1, 128>}, {pipeline_mode = #tpu.pipeline_mode<synchronous>, transform_indices = @transform_6, window_bounds = array<i64: 128, 128>}, {pipeline_mode = #tpu.pipeline_mode<synchronous>, transform_indices = @transform_7, window_bounds = array<i64: 1, 128>}, {transform_indices = @transform_8, window_bounds = array<i64: 1, 8, 128>}, {transform_indices = @transform_9, window_bounds = array<i64: 1, 128, 8>}, {transform_indices = @transform_10, window_bounds = array<i64: 1, 8, 128>}]} {
    %c0 = arith.constant 0 : index
    %c0_0 = arith.constant 0 : index
    %c0_1 = arith.constant 0 : index
    %0 = vector.load %arg2[%c0, %c0_0, %c0_1] : memref<1x8x128xf32, #tpu.memory_space<vmem>>, vector<1x8x128xf32>
    %1 = vector.shape_cast %0 : vector<1x8x128xf32> to vector<8x128xf32>
    %2 = arith.truncf %1 : vector<8x128xf32> to vector<8x128xbf16>
    %c0_2 = arith.constant 0 : index
    %c0_3 = arith.constant 0 : index
    %c0_4 = arith.constant 0 : index
    %3 = vector.load %arg3[%c0_2, %c0_3, %c0_4] : memref<1x8x128xf32, #tpu.memory_space<vmem>>, vector<1x8x128xf32>
    %4 = vector.shape_cast %3 : vector<1x8x128xf32> to vector<8x128xf32>
    %c0_5 = arith.constant 0 : index
    %c0_6 = arith.constant 0 : index
    %5 = vector.load %arg4[%c0_5, %c0_6] : memref<128x128xbf16, #tpu.memory_space<vmem>>, vector<128x128xbf16>
    %cst = arith.constant dense<0.000000e+00> : vector<8x128xf32>
    %6 = tpu.matmul %2, %5, %cst {dimension_numbers = #tpu.dot_dimension_numbers<[1], [0], [0], [1], [0, 0, 1, 1], [], []>} : vector<8x128xbf16>, vector<128x128xbf16>, vector<8x128xf32> -> vector<8x128xf32>
    %c0_7 = arith.constant 0 : index
    %c0_8 = arith.constant 0 : index
    %7 = vector.load %arg5[%c0_7, %c0_8] : memref<1x128xf32, #tpu.memory_space<vmem>>, vector<1x128xf32>
    %8 = vector.broadcast %7 : vector<1x128xf32> to vector<8x128xf32>
    %9 = arith.addf %6, %8 : vector<8x128xf32>
    %c0_9 = arith.constant 0 : index
    %c0_10 = arith.constant 0 : index
    %10 = vector.load %arg6[%c0_9, %c0_10] : memref<128x128xbf16, #tpu.memory_space<vmem>>, vector<128x128xbf16>
    %cst_11 = arith.constant dense<0.000000e+00> : vector<8x128xf32>
    %11 = tpu.matmul %2, %10, %cst_11 {dimension_numbers = #tpu.dot_dimension_numbers<[1], [0], [0], [1], [0, 0, 1, 1], [], []>} : vector<8x128xbf16>, vector<128x128xbf16>, vector<8x128xf32> -> vector<8x128xf32>
    %c0_12 = arith.constant 0 : index
    %c0_13 = arith.constant 0 : index
    %12 = vector.load %arg7[%c0_12, %c0_13] : memref<1x128xf32, #tpu.memory_space<vmem>>, vector<1x128xf32>
    %13 = vector.broadcast %12 : vector<1x128xf32> to vector<8x128xf32>
    %14 = arith.addf %11, %13 : vector<8x128xf32>
    %15 = arith.addf %14, %4 : vector<8x128xf32>
    %c0_14 = arith.constant 0 : index
    %c0_15 = arith.constant 0 : index
    %16 = vector.load %arg8[%c0_14, %c0_15] : memref<128x128xbf16, #tpu.memory_space<vmem>>, vector<128x128xbf16>
    %cst_16 = arith.constant dense<0.000000e+00> : vector<8x128xf32>
    %17 = tpu.matmul %2, %16, %cst_16 {dimension_numbers = #tpu.dot_dimension_numbers<[1], [0], [0], [1], [0, 0, 1, 1], [], []>} : vector<8x128xbf16>, vector<128x128xbf16>, vector<8x128xf32> -> vector<8x128xf32>
    %c0_17 = arith.constant 0 : index
    %c0_18 = arith.constant 0 : index
    %18 = vector.load %arg9[%c0_17, %c0_18] : memref<1x128xf32, #tpu.memory_space<vmem>>, vector<1x128xf32>
    %19 = vector.broadcast %18 : vector<1x128xf32> to vector<8x128xf32>
    %20 = arith.addf %17, %19 : vector<8x128xf32>
    %21 = arith.addf %20, %4 : vector<8x128xf32>
    %22 = arith.truncf %9 : vector<8x128xf32> to vector<8x128xbf16>
    %c0_19 = arith.constant 0 : index
    %c0_20 = arith.constant 0 : index
    %c0_21 = arith.constant 0 : index
    %23 = vector.load %arg10[%c0_19, %c0_20, %c0_21] : memref<1x8x128xbf16, #tpu.memory_space<vmem>>, vector<1x8x128xbf16>
    %24 = vector.shape_cast %23 : vector<1x8x128xbf16> to vector<8x128xbf16>
    %25 = vector.shape_cast %22 : vector<8x128xbf16> to vector<1x8x128xbf16>
    tpu.vector_store %arg10[%c0_19, %c0_20, %c0_21], %25 {strides = array<i32>} : memref<1x8x128xbf16, #tpu.memory_space<vmem>>, vector<1x8x128xbf16>,
    %26 = tpu.transpose %15, [1, 0] : vector<8x128xf32> -> vector<128x8xf32>
    %27 = arith.truncf %26 : vector<128x8xf32> to vector<128x8xbf16>
    %c0_22 = arith.constant 0 : index
    %c0_23 = arith.constant 0 : index
    %c0_24 = arith.constant 0 : index
    %28 = vector.load %arg11[%c0_22, %c0_23, %c0_24] : memref<1x128x8xbf16, #tpu.memory_space<vmem>>, vector<1x128x8xbf16>
    %29 = vector.shape_cast %28 : vector<1x128x8xbf16> to vector<128x8xbf16>
    %30 = vector.shape_cast %27 : vector<128x8xbf16> to vector<1x128x8xbf16>
    tpu.vector_store %arg11[%c0_22, %c0_23, %c0_24], %30 {strides = array<i32>} : memref<1x128x8xbf16, #tpu.memory_space<vmem>>, vector<1x128x8xbf16>,
    %31 = arith.truncf %21 : vector<8x128xf32> to vector<8x128xbf16>
    %c0_25 = arith.constant 0 : index
    %c0_26 = arith.constant 0 : index
    %c0_27 = arith.constant 0 : index
    %32 = vector.load %arg12[%c0_25, %c0_26, %c0_27] : memref<1x8x128xbf16, #tpu.memory_space<vmem>>, vector<1x8x128xbf16>
    %33 = vector.shape_cast %32 : vector<1x8x128xbf16> to vector<8x128xbf16>
    %34 = vector.shape_cast %31 : vector<8x128xbf16> to vector<1x8x128xbf16>
    tpu.vector_store %arg12[%c0_25, %c0_26, %c0_27], %34 {strides = array<i32>} : memref<1x8x128xbf16, #tpu.memory_space<vmem>>, vector<1x8x128xbf16>,
    return
  }
  func.func @transform_0(%arg0: i32, %arg1: i32) -> (i32, i32, i32) {
    %c0_i32 = arith.constant 0 : i32
    %c0_i32_0 = arith.constant 0 : i32
    return %arg0, %arg1, %c0_i32 : i32, i32, i32
  }
  func.func @transform_1(%arg0: i32, %arg1: i32) -> (i32, i32, i32) {
    %c0_i32 = arith.constant 0 : i32
    %c0_i32_0 = arith.constant 0 : i32
    return %arg0, %arg1, %c0_i32 : i32, i32, i32
  }
  func.func @transform_2(%arg0: i32, %arg1: i32) -> (i32, i32) {
    %c0_i32 = arith.constant 0 : i32
    %c0_i32_0 = arith.constant 0 : i32
    %c0_i32_1 = arith.constant 0 : i32
    return %c0_i32, %c0_i32_0 : i32, i32
  }
  func.func @transform_3(%arg0: i32, %arg1: i32) -> (i32, i32) {
    %c0_i32 = arith.constant 0 : i32
    %c0_i32_0 = arith.constant 0 : i32
    %c0_i32_1 = arith.constant 0 : i32
    return %c0_i32, %c0_i32_0 : i32, i32
  }
  func.func @transform_4(%arg0: i32, %arg1: i32) -> (i32, i32) {
    %c0_i32 = arith.constant 0 : i32
    %c0_i32_0 = arith.constant 0 : i32
    %c0_i32_1 = arith.constant 0 : i32
    return %c0_i32, %c0_i32_0 : i32, i32
  }
  func.func @transform_5(%arg0: i32, %arg1: i32) -> (i32, i32) {
    %c0_i32 = arith.constant 0 : i32
    %c0_i32_0 = arith.constant 0 : i32
    %c0_i32_1 = arith.constant 0 : i32
    return %c0_i32, %c0_i32_0 : i32, i32
  }
  func.func @transform_6(%arg0: i32, %arg1: i32) -> (i32, i32) {
    %c0_i32 = arith.constant 0 : i32
    %c0_i32_0 = arith.constant 0 : i32
    %c0_i32_1 = arith.constant 0 : i32
    return %c0_i32, %c0_i32_0 : i32, i32
  }
  func.func @transform_7(%arg0: i32, %arg1: i32) -> (i32, i32) {
    %c0_i32 = arith.constant 0 : i32
    %c0_i32_0 = arith.constant 0 : i32
    %c0_i32_1 = arith.constant 0 : i32
    return %c0_i32, %c0_i32_0 : i32, i32
  }
  func.func @transform_8(%arg0: i32, %arg1: i32) -> (i32, i32, i32) {
    %c0_i32 = arith.constant 0 : i32
    %c0_i32_0 = arith.constant 0 : i32
    return %arg0, %arg1, %c0_i32 : i32, i32, i32
  }
  func.func @transform_9(%arg0: i32, %arg1: i32) -> (i32, i32, i32) {
    %c0_i32 = arith.constant 0 : i32
    %c0_i32_0 = arith.constant 0 : i32
    return %arg0, %c0_i32, %arg1 : i32, i32, i32
  }
  func.func @transform_10(%arg0: i32, %arg1: i32) -> (i32, i32, i32) {
    %c0_i32 = arith.constant 0 : i32
    %c0_i32_0 = arith.constant 0 : i32
    return %arg0, %arg1, %c0_i32 : i32, i32, i32
  }
}

module attributes {stable_mosaic.version = 11 : i64} {
  func.func @_qkv_kernel(%arg0: i32, %arg1: i32, %arg2: memref<1x8x128xf32, #tpu.memory_space<vmem>>, %arg3: memref<1x8x128xf32, #tpu.memory_space<vmem>>, %arg4: memref<128x128xbf16, #tpu.memory_space<vmem>>, %arg5: memref<1x128xf32, #tpu.memory_space<vmem>>, %arg6: memref<128x128xbf16, #tpu.memory_space<vmem>>, %arg7: memref<1x128xf32, #tpu.memory_space<vmem>>, %arg8: memref<128x128xbf16, #tpu.memory_space<vmem>>, %arg9: memref<1x128xf32, #tpu.memory_space<vmem>>, %arg10: memref<1x8x128xbf16, #tpu.memory_space<vmem>>, %arg11: memref<1x128x8xbf16, #tpu.memory_space<vmem>>, %arg12: memref<1x8x128xbf16, #tpu.memory_space<vmem>>) attributes {dimension_semantics = [#tpu.dimension_semantics<parallel>, #tpu.dimension_semantics<parallel>], iteration_bounds = array<i64: 2, 1>, scalar_prefetch = 0 : i64, scratch_operands = 0 : i64, tpu.core_type = #tpu.core_type<tc>, window_params = [{transform_indices = @transform_0, window_bounds = array<i64: 1, 8, 128>}, {transform_indices = @transform_1, window_bounds = array<i64: 1, 8, 128>}, {pipeline_mode = #tpu.pipeline_mode<synchronous>, transform_indices = @transform_2, window_bounds = array<i64: 128, 128>}, {pipeline_mode = #tpu.pipeline_mode<synchronous>, transform_indices = @transform_3, window_bounds = array<i64: 1, 128>}, {pipeline_mode = #tpu.pipeline_mode<synchronous>, transform_indices = @transform_4, window_bounds = array<i64: 128, 128>}, {pipeline_mode = #tpu.pipeline_mode<synchronous>, transform_indices = @transform_5, window_bounds = array<i64: 1, 128>}, {pipeline_mode = #tpu.pipeline_mode<synchronous>, transform_indices = @transform_6, window_bounds = array<i64: 128, 128>}, {pipeline_mode = #tpu.pipeline_mode<synchronous>, transform_indices = @transform_7, window_bounds = array<i64: 1, 128>}, {transform_indices = @transform_8, window_bounds = array<i64: 1, 8, 128>}, {transform_indices = @transform_9, window_bounds = array<i64: 1, 128, 8>}, {transform_indices = @transform_10, window_bounds = array<i64: 1, 8, 128>}]} {
    %c0 = arith.constant 0 : index
    %c0_0 = arith.constant 0 : index
    %c0_1 = arith.constant 0 : index
    %0 = vector.load %arg2[%c0, %c0_0, %c0_1] : memref<1x8x128xf32, #tpu.memory_space<vmem>>, vector<1x8x128xf32>
    %1 = vector.shape_cast %0 : vector<1x8x128xf32> to vector<8x128xf32>
    %2 = arith.truncf %1 : vector<8x128xf32> to vector<8x128xbf16>
    %c0_2 = arith.constant 0 : index
    %c0_3 = arith.constant 0 : index
    %c0_4 = arith.constant 0 : index
    %3 = vector.load %arg3[%c0_2, %c0_3, %c0_4] : memref<1x8x128xf32, #tpu.memory_space<vmem>>, vector<1x8x128xf32>
    %4 = vector.shape_cast %3 : vector<1x8x128xf32> to vector<8x128xf32>
    %c0_5 = arith.constant 0 : index
    %c0_6 = arith.constant 0 : index
    %5 = vector.load %arg4[%c0_5, %c0_6] : memref<128x128xbf16, #tpu.memory_space<vmem>>, vector<128x128xbf16>
    %cst = arith.constant dense<0.000000e+00> : vector<8x128xf32>
    %6 = tpu.matmul %2, %5, %cst {dimension_numbers = #tpu.dot_dimension_numbers<[1], [0], [0], [1], [0, 0, 1, 1], [], []>} : vector<8x128xbf16>, vector<128x128xbf16>, vector<8x128xf32> -> vector<8x128xf32>
    %c0_7 = arith.constant 0 : index
    %c0_8 = arith.constant 0 : index
    %7 = vector.load %arg5[%c0_7, %c0_8] : memref<1x128xf32, #tpu.memory_space<vmem>>, vector<1x128xf32>
    %8 = vector.broadcast %7 : vector<1x128xf32> to vector<8x128xf32>
    %9 = arith.addf %6, %8 : vector<8x128xf32>
    %c0_9 = arith.constant 0 : index
    %c0_10 = arith.constant 0 : index
    %10 = vector.load %arg6[%c0_9, %c0_10] : memref<128x128xbf16, #tpu.memory_space<vmem>>, vector<128x128xbf16>
    %cst_11 = arith.constant dense<0.000000e+00> : vector<8x128xf32>
    %11 = tpu.matmul %2, %10, %cst_11 {dimension_numbers = #tpu.dot_dimension_numbers<[1], [0], [0], [1], [0, 0, 1, 1], [], []>} : vector<8x128xbf16>, vector<128x128xbf16>, vector<8x128xf32> -> vector<8x128xf32>
    %c0_12 = arith.constant 0 : index
    %c0_13 = arith.constant 0 : index
    %12 = vector.load %arg7[%c0_12, %c0_13] : memref<1x128xf32, #tpu.memory_space<vmem>>, vector<1x128xf32>
    %13 = vector.broadcast %12 : vector<1x128xf32> to vector<8x128xf32>
    %14 = arith.addf %11, %13 : vector<8x128xf32>
    %15 = arith.addf %14, %4 : vector<8x128xf32>
    %c0_14 = arith.constant 0 : index
    %c0_15 = arith.constant 0 : index
    %16 = vector.load %arg8[%c0_14, %c0_15] : memref<128x128xbf16, #tpu.memory_space<vmem>>, vector<128x128xbf16>
    %cst_16 = arith.constant dense<0.000000e+00> : vector<8x128xf32>
    %17 = tpu.matmul %2, %16, %cst_16 {dimension_numbers = #tpu.dot_dimension_numbers<[1], [0], [0], [1], [0, 0, 1, 1], [], []>} : vector<8x128xbf16>, vector<128x128xbf16>, vector<8x128xf32> -> vector<8x128xf32>
    %c0_17 = arith.constant 0 : index
    %c0_18 = arith.constant 0 : index
    %18 = vector.load %arg9[%c0_17, %c0_18] : memref<1x128xf32, #tpu.memory_space<vmem>>, vector<1x128xf32>
    %19 = vector.broadcast %18 : vector<1x128xf32> to vector<8x128xf32>
    %20 = arith.addf %17, %19 : vector<8x128xf32>
    %21 = arith.addf %20, %4 : vector<8x128xf32>
    %22 = arith.truncf %9 : vector<8x128xf32> to vector<8x128xbf16>
    %c0_19 = arith.constant 0 : index
    %c0_20 = arith.constant 0 : index
    %c0_21 = arith.constant 0 : index
    %23 = vector.load %arg10[%c0_19, %c0_20, %c0_21] : memref<1x8x128xbf16, #tpu.memory_space<vmem>>, vector<1x8x128xbf16>
    %24 = vector.shape_cast %23 : vector<1x8x128xbf16> to vector<8x128xbf16>
    %25 = vector.shape_cast %22 : vector<8x128xbf16> to vector<1x8x128xbf16>
    tpu.vector_store %arg10[%c0_19, %c0_20, %c0_21], %25 {strides = array<i32>} : memref<1x8x128xbf16, #tpu.memory_space<vmem>>, vector<1x8x128xbf16>,
    %26 = tpu.transpose %15, [1, 0] : vector<8x128xf32> -> vector<128x8xf32>
    %27 = arith.truncf %26 : vector<128x8xf32> to vector<128x8xbf16>
    %c0_22 = arith.constant 0 : index
    %c0_23 = arith.constant 0 : index
    %c0_24 = arith.constant 0 : index
    %28 = vector.load %arg11[%c0_22, %c0_23, %c0_24] : memref<1x128x8xbf16, #tpu.memory_space<vmem>>, vector<1x128x8xbf16>
    %29 = vector.shape_cast %28 : vector<1x128x8xbf16> to vector<128x8xbf16>
    %30 = vector.shape_cast %27 : vector<128x8xbf16> to vector<1x128x8xbf16>
    tpu.vector_store %arg11[%c0_22, %c0_23, %c0_24], %30 {strides = array<i32>} : memref<1x128x8xbf16, #tpu.memory_space<vmem>>, vector<1x128x8xbf16>,
    %31 = arith.truncf %21 : vector<8x128xf32> to vector<8x128xbf16>
    %c0_25 = arith.constant 0 : index
    %c0_26 = arith.constant 0 : index
    %c0_27 = arith.constant 0 : index
    %32 = vector.load %arg12[%c0_25, %c0_26, %c0_27] : memref<1x8x128xbf16, #tpu.memory_space<vmem>>, vector<1x8x128xbf16>
    %33 = vector.shape_cast %32 : vector<1x8x128xbf16> to vector<8x128xbf16>
    %34 = vector.shape_cast %31 : vector<8x128xbf16> to vector<1x8x128xbf16>
    tpu.vector_store %arg12[%c0_25, %c0_26, %c0_27], %34 {strides = array<i32>} : memref<1x8x128xbf16, #tpu.memory_space<vmem>>, vector<1x8x128xbf16>,
    return
  }
  func.func @transform_0(%arg0: i32, %arg1: i32) -> (i32, i32, i32) {
    %c0_i32 = arith.constant 0 : i32
    %c0_i32_0 = arith.constant 0 : i32
    return %arg0, %arg1, %c0_i32 : i32, i32, i32
  }
  func.func @transform_1(%arg0: i32, %arg1: i32) -> (i32, i32, i32) {
    %c0_i32 = arith.constant 0 : i32
    %c0_i32_0 = arith.constant 0 : i32
    return %arg0, %arg1, %c0_i32 : i32, i32, i32
  }
  func.func @transform_2(%arg0: i32, %arg1: i32) -> (i32, i32) {
    %c0_i32 = arith.constant 0 : i32
    %c0_i32_0 = arith.constant 0 : i32
    %c0_i32_1 = arith.constant 0 : i32
    return %c0_i32, %c0_i32_0 : i32, i32
  }
  func.func @transform_3(%arg0: i32, %arg1: i32) -> (i32, i32) {
    %c0_i32 = arith.constant 0 : i32
    %c0_i32_0 = arith.constant 0 : i32
    %c0_i32_1 = arith.constant 0 : i32
    return %c0_i32, %c0_i32_0 : i32, i32
  }
  func.func @transform_4(%arg0: i32, %arg1: i32) -> (i32, i32) {
    %c0_i32 = arith.constant 0 : i32
    %c0_i32_0 = arith.constant 0 : i32
    %c0_i32_1 = arith.constant 0 : i32
    return %c0_i32, %c0_i32_0 : i32, i32
  }
  func.func @transform_5(%arg0: i32, %arg1: i32) -> (i32, i32) {
    %c0_i32 = arith.constant 0 : i32
    %c0_i32_0 = arith.constant 0 : i32
    %c0_i32_1 = arith.constant 0 : i32
    return %c0_i32, %c0_i32_0 : i32, i32
  }
  func.func @transform_6(%arg0: i32, %arg1: i32) -> (i32, i32) {
    %c0_i32 = arith.constant 0 : i32
    %c0_i32_0 = arith.constant 0 : i32
    %c0_i32_1 = arith.constant 0 : i32
    return %c0_i32, %c0_i32_0 : i32, i32
  }
  func.func @transform_7(%arg0: i32, %arg1: i32) -> (i32, i32) {
    %c0_i32 = arith.constant 0 : i32
    %c0_i32_0 = arith.constant 0 : i32
    %c0_i32_1 = arith.constant 0 : i32
    return %c0_i32, %c0_i32_0 : i32, i32
  }
  func.func @transform_8(%arg0: i32, %arg1: i32) -> (i32, i32, i32) {
    %c0_i32 = arith.constant 0 : i32
    %c0_i32_0 = arith.constant 0 : i32
    return %arg0, %arg1, %c0_i32 : i32, i32, i32
  }
  func.func @transform_9(%arg0: i32, %arg1: i32) -> (i32, i32, i32) {
    %c0_i32 = arith.constant 0 : i32
    %c0_i32_0 = arith.constant 0 : i32
    return %arg0, %c0_i32, %arg1 : i32, i32, i32
  }
  func.func @transform_10(%arg0: i32, %arg1: i32) -> (i32, i32, i32) {
    %c0_i32 = arith.constant 0 : i32
    %c0_i32_0 = arith.constant 0 : i32
    return %arg0, %arg1, %c0_i32 : i32, i32, i32
  }
}

</mosaic_0001>

<bundles_post_ra>
// kernel: tpu_custom_call.1
= control target key start
LH: loop header
LB: loop body
LE: loop exit
PB: predicated region body
PF: predicated region fallthrough
CT: control target
= control target key end

     0   :  { %s1929_s0 = inlined_call_operand.hbm [shape: f32[2,8,128], index: 0, kind: input, shape index: {}]   ;;  %s1930_s1 = inlined_call_operand.hbm [shape: f32[2,8,128], index: 1, kind: input, shape index: {}]   ;;  %s1931_s2 = inlined_call_operand.hbm [shape: bf16[128,128], index: 2, kind: input, shape index: {}]   ;;  %s1932_s3 = inlined_call_operand.vmem [shape: f32[1,128], index: 3, kind: input, shape index: {}]   ;;  %s1933_s4 = inlined_call_operand.hbm [shape: bf16[128,128], index: 4, kind: input, shape index: {}]   ;;  %s1934_s5 = inlined_call_operand.vmem [shape: f32[1,128], index: 5, kind: input, shape index: {}]   ;;  %s1935_s6 = inlined_call_operand.hbm [shape: bf16[128,128], index: 6, kind: input, shape index: {}]   ;;  %s1936_s7 = inlined_call_operand.vmem [shape: f32[1,128], index: 7, kind: input, shape index: {}]   ;;  %s1937_s8 = inlined_call_operand.hbm [shape: bf16[2,8,128], index: 8, kind: output, shape index: {0}]   ;;  %s1938_s9 = inlined_call_operand.vmem [shape: bf16[2,128,8], index: 9, kind: output, shape index: {1}]   ;;  %s1939_s10 = inlined_call_operand.hbm [shape: bf16[2,8,128], index: 10, kind: output, shape index: {2}]  }
   0x1   :  { %1948 = sst [smem:[#allocation27_spill]] %s1931_s2 }
   0x2   :  { %1949 = sst [smem:[#allocation28_spill]] %s1933_s4 }
   0x3   :  { %1950 = sst [smem:[#allocation29_spill]] %s1935_s6 }
   0x4   :  { %1951 = sst [smem:[#allocation30_spill]] %s1939_s10 }
   0x5   :  { %16 = vsyncpa [#allocation3], 0 }
   0x6   :  { %18 = vsyncpa [#allocation3 + $0x1], 0 }
   0x7   :  { %19 = vsyncpa [#allocation6], 0 }
   0x8   :  { %21 = vsyncpa [#allocation6 + $0x1], 0 }
   0x9   :  { %22 = vsyncpa [#allocation9], 0 }
   0xa   :  { %23 = vsyncpa [#allocation4], 0 }
   0xb   :  { %25 = vsyncpa [#allocation4 + $0x1], 0 }
   0xc   :  { %26 = vsyncpa [#allocation13], 0 }
   0xd   :  { %28 = vsyncpa [#allocation13 + $0x1], 0  ;;  %s1680_s13 = smov 0   ;;  %s1682_s14 = smov 0  }
   0xe   :  { %s1684_s15 = smov 0   ;;  %s1686_s16 = smov 0  }
   0xf   :  { %s1688_s17 = smov 0   ;;  %s1690_s18 = smov 0  }
  0x10 LB: > { %1952 = sst [smem:[#allocation20_spill]] %s1598_s13  ;;  %s1711_s19 = sadd.s32 4294967295, %s1618_s18   ;;  %s1618_s18 = sphi %s1690_s18, %s34_s18   ;;  %s1614_s17 = sphi %s1688_s17, %s1975_s17   ;;  %s1610_s16 = sphi %s1686_s16, %s1974_s16   ;;  %s1606_s15 = sphi %s1684_s15, %s1973_s15   ;;  %s1602_s14 = sphi %s1682_s14, %s1977_s14   ;;  %s1598_s13 = sphi %s1680_s13, %s1976_s13  }
  0x11   : > { %1953 = sst [smem:[#allocation21_spill]] %s1606_s15  ;;  %p1087_p0 = scmp.ge.s32.totalorder %s1618_s18, 1 }
  0x12   : > { %1954 = sst [smem:[#allocation22_spill]] %s1614_s17  ;;  %p69_p1 = scmp.eq.s32.totalorder %s1711_s19, 0 }
  0x13   : > { %p317_p2 = scmp.lt.s32.totalorder %s1618_s18, 3  ;;  %s1955_s2 = sld [smem:[#allocation27_spill]] }
  0x14   : > { %s1620_s24 = smov [#allocation7]   ;;  %p1091_p6 = scmp.ge.s32.totalorder %s1618_s18, 2 }
  0x15   : > { %p1719_p3 = pnand %p1087_p0, %p317_p2  ;;  %s330_s25 = sshll.u32 %s1620_s24, 4  ;;  %s331_s25 = int_to_ptr.vmem [resolvable:$true] %s330_s25 }
  0x16   : > { %s1958_s4 = sld [smem:[#allocation28_spill]]  ;;  %s1621_s30 = smov 64  }
  0x17   : > { %p1253_p4 = pneg %p1719_p3  ;;  %s1622_s11 = smov 4  }
  0x18   : > { %s1623_s12 = smov [#allocation8]   ;;  %s1959_s6 = sld [smem:[#allocation29_spill]] }
  0x19   : > { %s328_s22 = sshll.u32 %s1955_s2, 4  ;;  %p1727_p5 = pnand %p1253_p4, %p69_p1  ;;  %s329_s22 = int_to_ptr.hbm [resolvable:$true] %s328_s22 }
  0x1a   : > { %s347_s20 = sshll.u32 %s1623_s12, 4  ;;  %s1624_s28 = smov [#allocation10]   ;;  %s348_s20 = int_to_ptr.vmem [resolvable:$true] %s347_s20 }
  0x1b   : > { %1256 = dma.hbm_to_vmem [thread:$0]  (!%p1727_p5), %s329_s22, 1024, %s331_s25, [#allocation6], %s1621_s30, %s1621_s30, %s1622_s11  }
  0x1c   : > { %s345_s29 = sshll.u32 %s1958_s4, 4  ;;  %s364_s2 = sshll.u32 %s1624_s28, 4  ;;  %s346_s29 = int_to_ptr.hbm [resolvable:$true] %s345_s29  ;;  %s365_s2 = int_to_ptr.vmem [resolvable:$true] %s364_s2 }
  0x1d   : > { %1259 = dma.hbm_to_vmem [thread:$0]  (!%p1727_p5), %s346_s29, 1024, %s348_s20, [#allocation9], %s1621_s30, %s1621_s30, %s1622_s11  }
  0x1e   : > { %s362_s27 = sshll.u32 %s1959_s6, 4  ;;  %s1086_s22 = sadd.s32 4294967294, %s1618_s18   ;;  %s363_s27 = int_to_ptr.hbm [resolvable:$true] %s362_s27 }
  0x1f   : > { %1262 = dma.hbm_to_vmem [thread:$0]  (!%p1727_p5), %s363_s27, 1024, %s365_s2, [#allocation9], %s1621_s30, %s1621_s30, %s1622_s11  }
  0x20   : > { %s46_s25 = sadd.s32 1, %s1614_s17  ;;  %s55_s12 = sadd.s32 1, %s1606_s15 }
  0x21   : > { %p48_p7 = scmp.ge.s32.totalorder %s46_s25, 2  ;;  %p62_p8 = scmp.ne.s32.totalorder %s1606_s15, %s1602_s14 }
  0x22   : > { %p63_p9 = scmp.eq.s32.totalorder %s1618_s18, 0  ;;  %p68_p10 = scmp.ne.s32.totalorder %s1602_s14, %s1598_s13 }
  0x23   : > { %s1979_s25 = smov (%p48_p7, %s46_s25), 0  ;;  %p248_p13 = scmp.eq.s32.totalorder %s1711_s19, 1 }
  0x24   : > { %1960 = sst [smem:[#allocation23_spill]] %s1979_s25  ;;  %p1754_p11 = por %p63_p9, %p62_p8 }
  0x25   : > { %p1760_p12 = por %p69_p1, %p68_p10  ;;  %s50_s26 = ssub.s32 %s1614_s17, %s1979_s25 }
  0x26   : > { %p53_p0 = scmp.eq.s32.totalorder %s50_s26, 0  ;;  %p254_p2 = scmp.eq.s32.totalorder %s1086_s22, 1 }
  0x27   : > { %p1767_p4 = por %p248_p13, %p62_p8  ;;  %p1280_p5 = scmp.lt.s32.totalorder %s1618_s18, 2 }
  0x28   : > { %s1773_s11 = scalar_select %p53_p0, %s1606_s15, %s55_s12  }
  0x29   : > { %s1963_s30 = scalar_select %p1767_p4, 1, 0 }
  0x2a   : > { %1965 = sst [smem:[#allocation25_spill]] %s1773_s11  ;;  %p1775_p7 = por %p254_p2, %p68_p10 }
  0x2b   : > { %1964 = sst [smem:[#allocation24_spill]] %s1963_s30  ;;  %s381_s21 = sand.u32 1, %s1606_s15  }
  0x2c   : > { %s1966_s20 = scalar_select %p1775_p7, 1, 0 }
  0x2d   : > { %s1092_s24 = sshll.u32 %s381_s21, 3  ;;  %s1093_s27 = sshll.u32 %s1614_s17, 3 }
  0x2e   : > { %1967 = sst [smem:[#allocation26_spill]] %s1966_s20  ;;  %s390_s26 = scalar_lea.hbm %s1929_s0, %s1093_s27 }
  0x2f   : > { %s385_s22 = scalar_lea.vmem [#allocation2], %s1092_s24  ;;  %s392_s25 = sshll.u32 %s390_s26, 4  ;;  %s393_s25 = int_to_ptr.hbm [resolvable:$true] %s392_s25 }
  0x30   : > { %s394_s6 = sshll.u32 %s385_s22, 4  ;;  %p1264_p8 = pnand %p1280_p5, %p1754_p11  ;;  %s395_s6 = int_to_ptr.vmem [resolvable:$true] %s394_s6 }
  0x31   : > { %s410_s13 = scalar_lea.hbm %s1930_s1, %s1093_s27  ;;  %s401_s30 = sand.u32 1, %s1618_s18  }
  0x32   : > { %s382_s20 = scalar_lea.sflag [#allocation3], %s381_s21  ;;  %s412_s15 = sshll.u32 %s410_s13, 4  ;;  %s413_s15 = int_to_ptr.hbm [resolvable:$true] %s412_s15 }
  0x33   : > { %1266 = dma.hbm_to_vmem [thread:$0]  (!%p1264_p8), %s393_s25, 128, %s395_s6, %s382_s20  }
  0x34   : > { %s405_s17 = scalar_lea.vmem [#allocation5], %s1092_s24  ;;  %s402_s4 = scalar_lea.sflag [#allocation6], %s401_s30 }
  0x35   : > { %s414_s10 = sshll.u32 %s405_s17, 4  ;;  %423 = sbr.rel (%p1719_p3) target bundleno = 523 (0x20b), region = 52  ;;  %s415_s10 = int_to_ptr.vmem [resolvable:$true] %s414_s10 }
  0x36   : > { %1269 = dma.hbm_to_vmem [thread:$0]  (!%p1264_p8), %s413_s15, 128, %s415_s10, %s402_s4  }
  0x37   : > { %s1793_s29 = sand.u32 (!%p1719_p3), 1, %s1602_s14  }
  0x38   : > { %s1097_s11 = sshll.u32 (!%p1719_p3), %s1793_s29, 3  ;;  %s426_s27 = scalar_lea.sflag (!%p1719_p3), [#allocation3], %s1793_s29 }
  0x39   : > { %s429_s21 = scalar_lea.vmem (!%p1719_p3), [#allocation2], %s1097_s11 }
  0x3a   : > { %1573 = dma.done.wait (%p1760_p12), %s426_s27, 128  }
  0x3b   : > { %1575 = vsyncadd (%p1760_p12), %s426_s27, 4294967168  ;;  %s435_s6 = sand.u32 1, %s1711_s19   ;;  %s1802_s13 = scalar_lea.vmem [#allocation5], %s1097_s11 }
  0x3c   : > { %s436_s10 = scalar_lea.sflag [#allocation6], %s435_s6 }
  0x3d   : > { %1577 = dma.done.wait (%p1760_p12), %s436_s10, 128  }
  0x3e   : > { %1579 = vsyncadd (%p1760_p12), %s436_s10, 4294967168 }
  0x3f   : > { %1581 = dma.done.wait (%p69_p1), [#allocation6], 1024  }
  0x40   : > { %1583 = vsyncadd (%p69_p1), [#allocation6], 4294966272 }
  0x41   : > { %1585 = dma.done.wait (%p69_p1), [#allocation9], 2048  }
  0x42   : > { %1587 = vsyncadd (%p69_p1), [#allocation9], 4294965248  ;;  %v1224_v0 = vld [vmem:[#allocation8 + $0x38] sm:$0xff]  ;;  %v1223_v1 = vld [vmem:[#allocation8 + $0x30] sm:$0xff]  ;;  %p510_p1 = scmp.lt.s32.totalorder %s1610_s16, 1  ;;  %vm816_vm0 = vcmask 60416  }
  0x43   : > { %670 = vmatpush.bf16.msra.mxu1 %v1224_v0  ;;  %v1222_v2 = vld [vmem:[#allocation8 + $0x28] sm:$0xff]  ;;  %v1221_v3 = vld [vmem:[#allocation8 + $0x20] sm:$0xff]  ;;  %v1220_v4 = vld [vmem:[#allocation8 + $0x18] sm:$0xff]  ;;  %s1102_s20 = sshll.u32 %s1793_s29, 2  ;;  %s1204_s24 = sshll.u32 %s1610_s16, 2 }
  0x44   : > { %v1219_v5 = vld [vmem:[#allocation8 + $0x10] sm:$0xff]  ;;  %v1218_v6 = vld [vmem:[#allocation8 + $0x8] sm:$0xff]  ;;  %v1217_v7 = vld [vmem:[#allocation8] sm:$0xff]  ;;  %s511_s19 = scalar_select %p510_p1, %s1610_s16, 1 }
  0x45   : > { %v518_v8 = vld [vmem:[%s429_s21] sm:$0xff]  ;;  %v1232_v10 = vld [vmem:[#allocation10 + $0x38] sm:$0xff]  ;;  %v1231_v12 = vld [vmem:[#allocation10 + $0x30] sm:$0xff]  ;;  %s860_s22 = scalar_lea.hbm %s1937_s8, %s1204_s24  ;;  %s1968_s6 = sld [smem:[#allocation30_spill]] }
  0x46   : > { %v519_v9 = vpack.c.bf16 %v518_v8, %v518_v8  ;;  %v1216_v11 = vld [vmem:[#allocation7 + $0x38] sm:$0xff]  ;;  %752 = vmatpush.bf16.msra.mxu2 %v1232_v10  ;;  %v1215_v13 = vld [vmem:[#allocation7 + $0x30] sm:$0xff]  ;;  %v1230_v14 = vld [vmem:[#allocation10 + $0x28] sm:$0xff]  ;;  %s1208_s23 = sshll.u32 %s511_s19, 6  ;;  %s864_s17 = sshll.u32 %s860_s22, 4  ;;  %s865_s17 = int_to_ptr.hbm [resolvable:$true] %s864_s17 }
  0x47   : > { %671 = vmatpush.bf16.msra.mxu1 %v1223_v1  ;;  %589 = vmatpush.bf16.msra.mxu0 %v1216_v11  ;;  %v1214_v15 = vld [vmem:[#allocation7 + $0x28] sm:$0xff]  ;;  %v1229_v16 = vld [vmem:[#allocation10 + $0x20] sm:$0xff]  ;;  %v1228_v18 = vld [vmem:[#allocation10 + $0x18] sm:$0xff]  ;;  %s1828_s30 = scalar_lea.vmem %s1938_s9, %s1208_s23  ;;  %s509_s19 = scalar_lea.vmem [#allocation12], %s1102_s20 }
  0x48   : > { %v1213_v17 = vld [vmem:[#allocation7 + $0x20] sm:$0xff]  ;;  %v1212_v19 = vld [vmem:[#allocation7 + $0x18] sm:$0xff]  ;;  %v1227_v20 = vld [vmem:[#allocation10 + $0x10] sm:$0xff]  ;;  %s880_s23 = sshll.u32 %s509_s19, 4  ;;  %s1506_s28 = sshra.s32 %s865_s17, 4  ;;  %s1865_s23 = int_to_ptr.vmem [resolvable:$true] %s880_s23  ;;  %s1507_s28 = int_to_ptr.hbm [resolvable:$true] %s1506_s28 }
  0x49   : > { %v1211_v21 = vld [vmem:[#allocation7 + $0x10] sm:$0xff]  ;;  %v1339_v22 = vld [vmem:[%s1934_s5] ss:$0 sm:$0xff]  ;;  %v1226_v23 = vld [vmem:[#allocation10 + $0x8] sm:$0xff]  ;;  %s1512_s12 = scalar_lea.hbm %s1937_s8, 8  ;;  %p1513_p11 = scmp.lt.s32.totalorder %s1507_s28, %s1937_s8 }
  0x4a   : > { %753 = vmatpush.bf16.msra.mxu2 %v1231_v12  ;;  %v1210_v24 = vld [vmem:[#allocation7 + $0x8] sm:$0xff]  ;;  %v1820_v26 = vld [vmem:[%s1802_s13] sm:$0xff]  ;;  %v1225_v28 = vld [vmem:[#allocation10] sm:$0xff]  ;;  %s492_s13 = scalar_lea.vmem [#allocation11], %s1102_s20  ;;  %s1508_s20 = scalar_lea.hbm %s1507_s28, 4 }
  0x4b   : > { %672 = vmatpush.bf16.msra.mxu1 %v1222_v2  ;;  %590 = vmatpush.bf16.msra.mxu0 %v1215_v13  ;;  %v1209_v29 = vld [vmem:[#allocation7] sm:$0xff]  ;;  %s878_s10 = scalar_lea.hbm %s1968_s6, %s1204_s24  ;;  %s862_s15 = sshll.u32 %s492_s13, 4  ;;  %s863_s15 = int_to_ptr.vmem [resolvable:$true] %s862_s15 }
  0x4c   : > { %v1340_v52 = vld [vmem:[%s1932_s3] ss:$0 sm:$0xff]  ;;  %s882_s25 = sshll.u32 %s878_s10, 4  ;;  %s836_s24 = scalar_lea.sflag [#allocation4], %s1793_s29  ;;  %s1867_s25 = int_to_ptr.hbm [resolvable:$true] %s882_s25 }
  0x4d   : > { %v1341_v54 = vld [vmem:[%s1936_s7] ss:$0 sm:$0xff]  ;;  %p1509_p3 = scmp.ne.s32.totalorder %s1507_s28, %s1508_s20  ;;  %p1514_p12 = scmp.lt.s32.totalorder %s1512_s12, %s1508_s20 }
  0x4e   : > { %754 = vmatpush.bf16.msra.mxu2 %v1230_v14 }
  0x4f   : > { %673 = vmatpush.bf16.msra.mxu1 %v1221_v3  ;;  %591 = vmatpush.bf16.msra.mxu0 %v1214_v15  ;;  %p1510_p9 = pnand %p1509_p3, %p1767_p4  ;;  %p1515_p13 = por %p1514_p12, %p1513_p11 }
  0x51   : > { %p1511_p10 = pneg %p1510_p9 }
  0x52   : > { %755 = vmatpush.bf16.msra.mxu2 %v1229_v16 }
  0x53   : > { %674 = vmatpush.bf16.msra.mxu1 %v1220_v4  ;;  %592 = vmatpush.bf16.msra.mxu0 %v1213_v17  ;;  %p1516_p0 = pnand %p1515_p13, %p1511_p10 }
  0x56   : > { %756 = vmatpush.bf16.msra.mxu2 %v1228_v18 }
  0x57   : > { %675 = vmatpush.bf16.msra.mxu1 %v1219_v5  ;;  %593 = vmatpush.bf16.msra.mxu0 %v1212_v19 }
  0x5a   : > { %757 = vmatpush.bf16.msra.mxu2 %v1227_v20 }
  0x5b   : > { %676 = vmatpush.bf16.msra.mxu1 %v1218_v6  ;;  %594 = vmatpush.bf16.msra.mxu0 %v1211_v21 }
  0x5e   : > { %758 = vmatpush.bf16.msra.mxu2 %v1226_v23 }
  0x5f   : > { %677 = vmatpush.bf16.msra.mxu1 %v1217_v7  ;;  %595 = vmatpush.bf16.msra.mxu0 %v1210_v24 }
  0x62   : > { %678 = vmatmul.bf16.vlgmr.msra.gmra.mxu1 %v519_v9  ;;  %759 = vmatpush.bf16.msra.mxu2 %v1225_v28 }
  0x63   : > { %596 = vmatpush.bf16.msra.mxu0 %v1209_v29 }
  0x65   : > { %760 = vmatmul.bf16.vlgmr.msra.gmra.mxu2 %v519_v9 }
  0x66   : > { %597 = vmatmul.bf16.vlgmr.msra.gmra.mxu0 %v519_v9 }
  0xdf   : > { %v679_v25 = vpop.f32.mrf.mxu1 }
  0xe0   : > { %v680_v27 = vadd.f32 %v1339_v22, %v679_v25 }
  0xe2   : > { %v683_v30 = vadd.f32 %v680_v27, %v1820_v26 }
  0xe3   : > { %v598_v53 = vpop.f32.mrf.mxu0 }
  0xe4   : > { %768 = vxpose.xlu0.b32.start.end [1/1] (short) %v683_v30, 128  ;;  %v599_v56 = vadd.f32 %v1340_v52, %v598_v53 }
  0xe6   : > { %v766_v58 = vpack.c.bf16 %v599_v56, %v599_v56 }
  0xe7   : > { %v681_v31 = vpop.f32.mrf.mxu1 }
  0xe8   : > { %v761_v55 = vpop.f32.mrf.mxu2  ;;  %767 = vst [vmem:[%s492_s13] sm:$0xf] %v766_v58 }
  0xe9   : > { %v762_v57 = vadd.f32 %v1341_v54, %v761_v55 }
  0xeb   : > { %v765_v59 = vadd.f32 %v762_v57, %v1820_v26 }
  0xed   : > { %v833_v62 = vpack.c.bf16 %v765_v59, %v765_v59 }
 0x188   : > { %v784_v32 = vpop.trf.xlu0 }
 0x189   : > { %v800_v33 = vpack.c.bf16 %v784_v32, %v784_v32 }
 0x18b   : > { %817 = vst.msk [vmem:[%s1828_s30] sm:$0xf] %vm816_vm0, %v800_v33 }
 0x190   : > { %v785_v34 = vpop.trf.xlu0 }
 0x191   : > { %v801_v35 = vpack.c.bf16 %v785_v34, %v785_v34 }
 0x193   : > { %818 = vst.msk [vmem:[%s1828_s30 + $0x4] sm:$0xf] %vm816_vm0, %v801_v35 }
 0x198   : > { %v786_v36 = vpop.trf.xlu0 }
 0x199   : > { %v802_v37 = vpack.c.bf16 %v786_v36, %v786_v36 }
 0x19b   : > { %819 = vst.msk [vmem:[%s1828_s30 + $0x8] sm:$0xf] %vm816_vm0, %v802_v37 }
 0x1a0   : > { %v787_v38 = vpop.trf.xlu0 }
 0x1a1   : > { %v803_v39 = vpack.c.bf16 %v787_v38, %v787_v38 }
 0x1a3   : > { %820 = vst.msk [vmem:[%s1828_s30 + $0xc] sm:$0xf] %vm816_vm0, %v803_v39 }
 0x1a8   : > { %v788_v40 = vpop.trf.xlu0 }
 0x1a9   : > { %v804_v41 = vpack.c.bf16 %v788_v40, %v788_v40 }
 0x1ab   : > { %821 = vst.msk [vmem:[%s1828_s30 + $0x10] sm:$0xf] %vm816_vm0, %v804_v41 }
 0x1b0   : > { %v789_v42 = vpop.trf.xlu0 }
 0x1b1   : > { %v805_v43 = vpack.c.bf16 %v789_v42, %v789_v42 }
 0x1b3   : > { %822 = vst.msk [vmem:[%s1828_s30 + $0x14] sm:$0xf] %vm816_vm0, %v805_v43 }
 0x1b8   : > { %v790_v44 = vpop.trf.xlu0 }
 0x1b9   : > { %v806_v45 = vpack.c.bf16 %v790_v44, %v790_v44 }
 0x1bb   : > { %823 = vst.msk [vmem:[%s1828_s30 + $0x18] sm:$0xf] %vm816_vm0, %v806_v45 }
 0x1c0   : > { %v791_v46 = vpop.trf.xlu0 }
 0x1c1   : > { %v807_v47 = vpack.c.bf16 %v791_v46, %v791_v46 }
 0x1c3   : > { %824 = vst.msk [vmem:[%s1828_s30 + $0x1c] sm:$0xf] %vm816_vm0, %v807_v47 }
 0x1c8   : > { %v792_v48 = vpop.trf.xlu0 }
 0x1c9   : > { %v808_v49 = vpack.c.bf16 %v792_v48, %v792_v48 }
 0x1cb   : > { %825 = vst.msk [vmem:[%s1828_s30 + $0x20] sm:$0xf] %vm816_vm0, %v808_v49 }
 0x1d0   : > { %v793_v50 = vpop.trf.xlu0 }
 0x1d1   : > { %v809_v51 = vpack.c.bf16 %v793_v50, %v793_v50 }
 0x1d3   : > { %826 = vst.msk [vmem:[%s1828_s30 + $0x24] sm:$0xf] %vm816_vm0, %v809_v51 }
 0x1d8   : > { %v794_v60 = vpop.trf.xlu0 }
 0x1d9   : > { %v810_v61 = vpack.c.bf16 %v794_v60, %v794_v60 }
 0x1da   : > { %1519 = shalt.err (!%p1516_p0)
}
 0x1db   : > { %1249 = dma.vmem_to_hbm [thread:$0]  (%p1767_p4), %s863_s15, 64, %s865_s17, %s836_s24   ;;  %827 = vst.msk [vmem:[%s1828_s30 + $0x28] sm:$0xf] %vm816_vm0, %v810_v61  ;;  %v600_v63 = vpop.f32.mrf.mxu0  ;;  %v763_v0 = vpop.f32.mrf.mxu2 }
 0x1dc   : > { %834 = vst [vmem:[%s509_s19] sm:$0xf] %v833_v62  ;;  %s849_s27 = scalar_lea.sflag [#allocation13], %s1793_s29  ;;  %s1534_s21 = sshra.s32 %s1867_s25, 4  ;;  %s1535_s21 = int_to_ptr.hbm [resolvable:$true] %s1534_s21 }
 0x1dd   : > { %s1536_s16 = scalar_lea.hbm %s1535_s21, 4  ;;  %s1540_s28 = scalar_lea.hbm %s1968_s6, 8 }
 0x1de   : > { %p1537_p2 = scmp.ne.s32.totalorder %s1535_s21, %s1536_s16  ;;  %p1541_p1 = scmp.lt.s32.totalorder %s1535_s21, %s1968_s6 }
 0x1df   : > { %p1542_p3 = scmp.lt.s32.totalorder %s1540_s28, %s1536_s16 }
 0x1e0   : > { %p1538_p5 = pnand %p1537_p2, %p1767_p4 }
 0x1e1   : > { %p1543_p9 = por %p1542_p3, %p1541_p1 }
 0x1e2   : > { %p1539_p8 = pneg %p1538_p5 }
 0x1e4   : > { %p1544_p10 = pnand %p1543_p9, %p1539_p8 }
 0x1e6   : > { %1547 = shalt.err (!%p1544_p10)
}
 0x1e7   : > { %1250 = dma.vmem_to_hbm [thread:$0]  (%p1767_p4), %s1865_s23, 64, %s1867_s25, %s849_s27   ;;  %v795_v1 = vpop.trf.xlu0 }
 0x1e8   : > { %v811_v2 = vpack.c.bf16 %v795_v1, %v795_v1 }
 0x1ea   : > { %828 = vst.msk [vmem:[%s1828_s30 + $0x2c] sm:$0xf] %vm816_vm0, %v811_v2 }
 0x1ef   : > { %v796_v3 = vpop.trf.xlu0 }
 0x1f0   : > { %v812_v4 = vpack.c.bf16 %v796_v3, %v796_v3 }
 0x1f2   : > { %829 = vst.msk [vmem:[%s1828_s30 + $0x30] sm:$0xf] %vm816_vm0, %v812_v4 }
 0x1f7   : > { %v797_v5 = vpop.trf.xlu0 }
 0x1f8   : > { %v813_v6 = vpack.c.bf16 %v797_v5, %v797_v5 }
 0x1fa   : > { %830 = vst.msk [vmem:[%s1828_s30 + $0x34] sm:$0xf] %vm816_vm0, %v813_v6 }
 0x1ff   : > { %v798_v7 = vpop.trf.xlu0 }
 0x200   : > { %v814_v8 = vpack.c.bf16 %v798_v7, %v798_v7 }
 0x202   : > { %831 = vst.msk [vmem:[%s1828_s30 + $0x38] sm:$0xf] %vm816_vm0, %v814_v8 }
 0x207   : > { %v799_v9 = vpop.trf.xlu0 }
 0x208   : > { %v815_v10 = vpack.c.bf16 %v799_v9, %v799_v9 }
 0x20a   : > { %832 = vst.msk [vmem:[%s1828_s30 + $0x3c] sm:$0xf] %vm816_vm0, %v815_v10 }
 0x20b PF: > { %s1970_s29 = sld [smem:[#allocation20_spill]]  ;;  %p1271_p4 = pnand %p1091_p6, %p1775_p7 }
 0x20d   : > { %p1272_p11 = pneg %p1271_p4 }
 0x211   : > { %s894_s17 = sand.u32 1, %s1970_s29  }
 0x212   : > { %s895_s19 = scalar_lea.sflag [#allocation4], %s894_s17 }
 0x213   : > { %1589 = dma.done.wait (%p1272_p11), %s895_s19, 64  }
 0x214   : > { %1591 = vsyncadd (%p1272_p11), %s895_s19, 4294967232  ;;  %s916_s23 = scalar_lea.sflag [#allocation13], %s894_s17 }
 0x215   : > { %1593 = dma.done.wait (%p1272_p11), %s916_s23, 64  }
 0x216   : > { %1595 = vsyncadd (%p1272_p11), %s916_s23, 4294967232  ;;  %s34_s18 = sadd.s32 1, %s1618_s18   ;;  %s1972_s30 = sld [smem:[#allocation21_spill]] }
 0x217   : > { %p31_p12 = scmp.ge.s32.totalorder %s34_s18, 4   ;;  %s1973_s15 = sld [smem:[#allocation25_spill]] }
 0x218   : > { %s1974_s16 = sld [smem:[#allocation22_spill]]  ;;  %s1976_s13 = smov %s1602_s14 }
 0x219   : > { %s1975_s17 = sld [smem:[#allocation23_spill]]  ;;  %33 = sbr.rel (!%p31_p12) target bundleno = 16 (0x10), region = 151 }
 0x21c   : > { %s1977_s14 = smov %s1972_s30 }
 0x21e   :  { %922 = vsyncpa [#allocation3], 1 }
 0x21f   :  { %924 = vsyncpa [#allocation3 + $0x1], 1 }
 0x220   :  { %925 = vsyncpa [#allocation6], 1 }
 0x221   :  { %927 = vsyncpa [#allocation6 + $0x1], 1 }
 0x222   :  { %928 = vsyncpa [#allocation9], 1 }
 0x223   :  { %929 = vsyncpa [#allocation4], 1 }
 0x224   :  { %931 = vsyncpa [#allocation4 + $0x1], 1 }
 0x225   :  { %932 = vsyncpa [#allocation13], 1 }
 0x226   :  { %934 = vsyncpa [#allocation13 + $0x1], 1 }

// kernel: tpu_custom_call.1
= control target key start
LH: loop header
LB: loop body
LE: loop exit
PB: predicated region body
PF: predicated region fallthrough
CT: control target
= control target key end

     0   :  { %s1929_s0 = inlined_call_operand.hbm [shape: f32[2,8,128], index: 0, kind: input, shape index: {}]   ;;  %s1930_s1 = inlined_call_operand.hbm [shape: f32[2,8,128], index: 1, kind: input, shape index: {}]   ;;  %s1931_s2 = inlined_call_operand.hbm [shape: bf16[128,128], index: 2, kind: input, shape index: {}]   ;;  %s1932_s3 = inlined_call_operand.vmem [shape: f32[1,128], index: 3, kind: input, shape index: {}]   ;;  %s1933_s4 = inlined_call_operand.hbm [shape: bf16[128,128], index: 4, kind: input, shape index: {}]   ;;  %s1934_s5 = inlined_call_operand.vmem [shape: f32[1,128], index: 5, kind: input, shape index: {}]   ;;  %s1935_s6 = inlined_call_operand.hbm [shape: bf16[128,128], index: 6, kind: input, shape index: {}]   ;;  %s1936_s7 = inlined_call_operand.vmem [shape: f32[1,128], index: 7, kind: input, shape index: {}]   ;;  %s1937_s8 = inlined_call_operand.hbm [shape: bf16[2,8,128], index: 8, kind: output, shape index: {0}]   ;;  %s1938_s9 = inlined_call_operand.vmem [shape: bf16[2,128,8], index: 9, kind: output, shape index: {1}]   ;;  %s1939_s10 = inlined_call_operand.hbm [shape: bf16[2,8,128], index: 10, kind: output, shape index: {2}]  }
   0x1   :  { %1948 = sst [smem:[#allocation27_spill]] %s1931_s2 }
   0x2   :  { %1949 = sst [smem:[#allocation28_spill]] %s1933_s4 }
   0x3   :  { %1950 = sst [smem:[#allocation29_spill]] %s1935_s6 }
   0x4   :  { %1951 = sst [smem:[#allocation30_spill]] %s1939_s10 }
   0x5   :  { %16 = vsyncpa [#allocation3], 0 }
   0x6   :  { %18 = vsyncpa [#allocation3 + $0x1], 0 }
   0x7   :  { %19 = vsyncpa [#allocation6], 0 }
   0x8   :  { %21 = vsyncpa [#allocation6 + $0x1], 0 }
   0x9   :  { %22 = vsyncpa [#allocation9], 0 }
   0xa   :  { %23 = vsyncpa [#allocation4], 0 }
   0xb   :  { %25 = vsyncpa [#allocation4 + $0x1], 0 }
   0xc   :  { %26 = vsyncpa [#allocation13], 0 }
   0xd   :  { %28 = vsyncpa [#allocation13 + $0x1], 0  ;;  %s1680_s13 = smov 0   ;;  %s1682_s14 = smov 0  }
   0xe   :  { %s1684_s15 = smov 0   ;;  %s1686_s16 = smov 0  }
   0xf   :  { %s1688_s17 = smov 0   ;;  %s1690_s18 = smov 0  }
  0x10 LB: > { %1952 = sst [smem:[#allocation20_spill]] %s1598_s13  ;;  %s1711_s19 = sadd.s32 4294967295, %s1618_s18   ;;  %s1618_s18 = sphi %s1690_s18, %s34_s18   ;;  %s1614_s17 = sphi %s1688_s17, %s1975_s17   ;;  %s1610_s16 = sphi %s1686_s16, %s1974_s16   ;;  %s1606_s15 = sphi %s1684_s15, %s1973_s15   ;;  %s1602_s14 = sphi %s1682_s14, %s1977_s14   ;;  %s1598_s13 = sphi %s1680_s13, %s1976_s13  }
  0x11   : > { %1953 = sst [smem:[#allocation21_spill]] %s1606_s15  ;;  %p1087_p0 = scmp.ge.s32.totalorder %s1618_s18, 1 }
  0x12   : > { %1954 = sst [smem:[#allocation22_spill]] %s1614_s17  ;;  %p69_p1 = scmp.eq.s32.totalorder %s1711_s19, 0 }
  0x13   : > { %p317_p2 = scmp.lt.s32.totalorder %s1618_s18, 3  ;;  %s1955_s2 = sld [smem:[#allocation27_spill]] }
  0x14   : > { %s1620_s24 = smov [#allocation7]   ;;  %p1091_p6 = scmp.ge.s32.totalorder %s1618_s18, 2 }
  0x15   : > { %p1719_p3 = pnand %p1087_p0, %p317_p2  ;;  %s330_s25 = sshll.u32 %s1620_s24, 4  ;;  %s331_s25 = int_to_ptr.vmem [resolvable:$true] %s330_s25 }
  0x16   : > { %s1958_s4 = sld [smem:[#allocation28_spill]]  ;;  %s1621_s30 = smov 64  }
  0x17   : > { %p1253_p4 = pneg %p1719_p3  ;;  %s1622_s11 = smov 4  }
  0x18   : > { %s1623_s12 = smov [#allocation8]   ;;  %s1959_s6 = sld [smem:[#allocation29_spill]] }
  0x19   : > { %s328_s22 = sshll.u32 %s1955_s2, 4  ;;  %p1727_p5 = pnand %p1253_p4, %p69_p1  ;;  %s329_s22 = int_to_ptr.hbm [resolvable:$true] %s328_s22 }
  0x1a   : > { %s347_s20 = sshll.u32 %s1623_s12, 4  ;;  %s1624_s28 = smov [#allocation10]   ;;  %s348_s20 = int_to_ptr.vmem [resolvable:$true] %s347_s20 }
  0x1b   : > { %1256 = dma.hbm_to_vmem [thread:$0]  (!%p1727_p5), %s329_s22, 1024, %s331_s25, [#allocation6], %s1621_s30, %s1621_s30, %s1622_s11  }
  0x1c   : > { %s345_s29 = sshll.u32 %s1958_s4, 4  ;;  %s364_s2 = sshll.u32 %s1624_s28, 4  ;;  %s346_s29 = int_to_ptr.hbm [resolvable:$true] %s345_s29  ;;  %s365_s2 = int_to_ptr.vmem [resolvable:$true] %s364_s2 }
  0x1d   : > { %1259 = dma.hbm_to_vmem [thread:$0]  (!%p1727_p5), %s346_s29, 1024, %s348_s20, [#allocation9], %s1621_s30, %s1621_s30, %s1622_s11  }
  0x1e   : > { %s362_s27 = sshll.u32 %s1959_s6, 4  ;;  %s1086_s22 = sadd.s32 4294967294, %s1618_s18   ;;  %s363_s27 = int_to_ptr.hbm [resolvable:$true] %s362_s27 }
  0x1f   : > { %1262 = dma.hbm_to_vmem [thread:$0]  (!%p1727_p5), %s363_s27, 1024, %s365_s2, [#allocation9], %s1621_s30, %s1621_s30, %s1622_s11  }
  0x20   : > { %s46_s25 = sadd.s32 1, %s1614_s17  ;;  %s55_s12 = sadd.s32 1, %s1606_s15 }
  0x21   : > { %p48_p7 = scmp.ge.s32.totalorder %s46_s25, 2  ;;  %p62_p8 = scmp.ne.s32.totalorder %s1606_s15, %s1602_s14 }
  0x22   : > { %p63_p9 = scmp.eq.s32.totalorder %s1618_s18, 0  ;;  %p68_p10 = scmp.ne.s32.totalorder %s1602_s14, %s1598_s13 }
  0x23   : > { %s1979_s25 = smov (%p48_p7, %s46_s25), 0  ;;  %p248_p13 = scmp.eq.s32.totalorder %s1711_s19, 1 }
  0x24   : > { %1960 = sst [smem:[#allocation23_spill]] %s1979_s25  ;;  %p1754_p11 = por %p63_p9, %p62_p8 }
  0x25   : > { %p1760_p12 = por %p69_p1, %p68_p10  ;;  %s50_s26 = ssub.s32 %s1614_s17, %s1979_s25 }
  0x26   : > { %p53_p0 = scmp.eq.s32.totalorder %s50_s26, 0  ;;  %p254_p2 = scmp.eq.s32.totalorder %s1086_s22, 1 }
  0x27   : > { %p1767_p4 = por %p248_p13, %p62_p8  ;;  %p1280_p5 = scmp.lt.s32.totalorder %s1618_s18, 2 }
  0x28   : > { %s1773_s11 = scalar_select %p53_p0, %s1606_s15, %s55_s12  }
  0x29   : > { %s1963_s30 = scalar_select %p1767_p4, 1, 0 }
  0x2a   : > { %1965 = sst [smem:[#allocation25_spill]] %s1773_s11  ;;  %p1775_p7 = por %p254_p2, %p68_p10 }
  0x2b   : > { %1964 = sst [smem:[#allocation24_spill]] %s1963_s30  ;;  %s381_s21 = sand.u32 1, %s1606_s15  }
  0x2c   : > { %s1966_s20 = scalar_select %p1775_p7, 1, 0 }
  0x2d   : > { %s1092_s24 = sshll.u32 %s381_s21, 3  ;;  %s1093_s27 = sshll.u32 %s1614_s17, 3 }
  0x2e   : > { %1967 = sst [smem:[#allocation26_spill]] %s1966_s20  ;;  %s390_s26 = scalar_lea.hbm %s1929_s0, %s1093_s27 }
  0x2f   : > { %s385_s22 = scalar_lea.vmem [#allocation2], %s1092_s24  ;;  %s392_s25 = sshll.u32 %s390_s26, 4  ;;  %s393_s25 = int_to_ptr.hbm [resolvable:$true] %s392_s25 }
  0x30   : > { %s394_s6 = sshll.u32 %s385_s22, 4  ;;  %p1264_p8 = pnand %p1280_p5, %p1754_p11  ;;  %s395_s6 = int_to_ptr.vmem [resolvable:$true] %s394_s6 }
  0x31   : > { %s410_s13 = scalar_lea.hbm %s1930_s1, %s1093_s27  ;;  %s401_s30 = sand.u32 1, %s1618_s18  }
  0x32   : > { %s382_s20 = scalar_lea.sflag [#allocation3], %s381_s21  ;;  %s412_s15 = sshll.u32 %s410_s13, 4  ;;  %s413_s15 = int_to_ptr.hbm [resolvable:$true] %s412_s15 }
  0x33   : > { %1266 = dma.hbm_to_vmem [thread:$0]  (!%p1264_p8), %s393_s25, 128, %s395_s6, %s382_s20  }
  0x34   : > { %s405_s17 = scalar_lea.vmem [#allocation5], %s1092_s24  ;;  %s402_s4 = scalar_lea.sflag [#allocation6], %s401_s30 }
  0x35   : > { %s414_s10 = sshll.u32 %s405_s17, 4  ;;  %423 = sbr.rel (%p1719_p3) target bundleno = 523 (0x20b), region = 52  ;;  %s415_s10 = int_to_ptr.vmem [resolvable:$true] %s414_s10 }
  0x36   : > { %1269 = dma.hbm_to_vmem [thread:$0]  (!%p1264_p8), %s413_s15, 128, %s415_s10, %s402_s4  }
  0x37   : > { %s1793_s29 = sand.u32 (!%p1719_p3), 1, %s1602_s14  }
  0x38   : > { %s1097_s11 = sshll.u32 (!%p1719_p3), %s1793_s29, 3  ;;  %s426_s27 = scalar_lea.sflag (!%p1719_p3), [#allocation3], %s1793_s29 }
  0x39   : > { %s429_s21 = scalar_lea.vmem (!%p1719_p3), [#allocation2], %s1097_s11 }
  0x3a   : > { %1573 = dma.done.wait (%p1760_p12), %s426_s27, 128  }
  0x3b   : > { %1575 = vsyncadd (%p1760_p12), %s426_s27, 4294967168  ;;  %s435_s6 = sand.u32 1, %s1711_s19   ;;  %s1802_s13 = scalar_lea.vmem [#allocation5], %s1097_s11 }
  0x3c   : > { %s436_s10 = scalar_lea.sflag [#allocation6], %s435_s6 }
  0x3d   : > { %1577 = dma.done.wait (%p1760_p12), %s436_s10, 128  }
  0x3e   : > { %1579 = vsyncadd (%p1760_p12), %s436_s10, 4294967168 }
  0x3f   : > { %1581 = dma.done.wait (%p69_p1), [#allocation6], 1024  }
  0x40   : > { %1583 = vsyncadd (%p69_p1), [#allocation6], 4294966272 }
  0x41   : > { %1585 = dma.done.wait (%p69_p1), [#allocation9], 2048  }
  0x42   : > { %1587 = vsyncadd (%p69_p1), [#allocation9], 4294965248  ;;  %v1224_v0 = vld [vmem:[#allocation8 + $0x38] sm:$0xff]  ;;  %v1223_v1 = vld [vmem:[#allocation8 + $0x30] sm:$0xff]  ;;  %p510_p1 = scmp.lt.s32.totalorder %s1610_s16, 1  ;;  %vm816_vm0 = vcmask 60416  }
  0x43   : > { %670 = vmatpush.bf16.msra.mxu1 %v1224_v0  ;;  %v1222_v2 = vld [vmem:[#allocation8 + $0x28] sm:$0xff]  ;;  %v1221_v3 = vld [vmem:[#allocation8 + $0x20] sm:$0xff]  ;;  %v1220_v4 = vld [vmem:[#allocation8 + $0x18] sm:$0xff]  ;;  %s1102_s20 = sshll.u32 %s1793_s29, 2  ;;  %s1204_s24 = sshll.u32 %s1610_s16, 2 }
  0x44   : > { %v1219_v5 = vld [vmem:[#allocation8 + $0x10] sm:$0xff]  ;;  %v1218_v6 = vld [vmem:[#allocation8 + $0x8] sm:$0xff]  ;;  %v1217_v7 = vld [vmem:[#allocation8] sm:$0xff]  ;;  %s511_s19 = scalar_select %p510_p1, %s1610_s16, 1 }
  0x45   : > { %v518_v8 = vld [vmem:[%s429_s21] sm:$0xff]  ;;  %v1232_v10 = vld [vmem:[#allocation10 + $0x38] sm:$0xff]  ;;  %v1231_v12 = vld [vmem:[#allocation10 + $0x30] sm:$0xff]  ;;  %s860_s22 = scalar_lea.hbm %s1937_s8, %s1204_s24  ;;  %s1968_s6 = sld [smem:[#allocation30_spill]] }
  0x46   : > { %v519_v9 = vpack.c.bf16 %v518_v8, %v518_v8  ;;  %v1216_v11 = vld [vmem:[#allocation7 + $0x38] sm:$0xff]  ;;  %752 = vmatpush.bf16.msra.mxu2 %v1232_v10  ;;  %v1215_v13 = vld [vmem:[#allocation7 + $0x30] sm:$0xff]  ;;  %v1230_v14 = vld [vmem:[#allocation10 + $0x28] sm:$0xff]  ;;  %s1208_s23 = sshll.u32 %s511_s19, 6  ;;  %s864_s17 = sshll.u32 %s860_s22, 4  ;;  %s865_s17 = int_to_ptr.hbm [resolvable:$true] %s864_s17 }
  0x47   : > { %671 = vmatpush.bf16.msra.mxu1 %v1223_v1  ;;  %589 = vmatpush.bf16.msra.mxu0 %v1216_v11  ;;  %v1214_v15 = vld [vmem:[#allocation7 + $0x28] sm:$0xff]  ;;  %v1229_v16 = vld [vmem:[#allocation10 + $0x20] sm:$0xff]  ;;  %v1228_v18 = vld [vmem:[#allocation10 + $0x18] sm:$0xff]  ;;  %s1828_s30 = scalar_lea.vmem %s1938_s9, %s1208_s23  ;;  %s509_s19 = scalar_lea.vmem [#allocation12], %s1102_s20 }
  0x48   : > { %v1213_v17 = vld [vmem:[#allocation7 + $0x20] sm:$0xff]  ;;  %v1212_v19 = vld [vmem:[#allocation7 + $0x18] sm:$0xff]  ;;  %v1227_v20 = vld [vmem:[#allocation10 + $0x10] sm:$0xff]  ;;  %s880_s23 = sshll.u32 %s509_s19, 4  ;;  %s1506_s28 = sshra.s32 %s865_s17, 4  ;;  %s1865_s23 = int_to_ptr.vmem [resolvable:$true] %s880_s23  ;;  %s1507_s28 = int_to_ptr.hbm [resolvable:$true] %s1506_s28 }
  0x49   : > { %v1211_v21 = vld [vmem:[#allocation7 + $0x10] sm:$0xff]  ;;  %v1339_v22 = vld [vmem:[%s1934_s5] ss:$0 sm:$0xff]  ;;  %v1226_v23 = vld [vmem:[#allocation10 + $0x8] sm:$0xff]  ;;  %s1512_s12 = scalar_lea.hbm %s1937_s8, 8  ;;  %p1513_p11 = scmp.lt.s32.totalorder %s1507_s28, %s1937_s8 }
  0x4a   : > { %753 = vmatpush.bf16.msra.mxu2 %v1231_v12  ;;  %v1210_v24 = vld [vmem:[#allocation7 + $0x8] sm:$0xff]  ;;  %v1820_v26 = vld [vmem:[%s1802_s13] sm:$0xff]  ;;  %v1225_v28 = vld [vmem:[#allocation10] sm:$0xff]  ;;  %s492_s13 = scalar_lea.vmem [#allocation11], %s1102_s20  ;;  %s1508_s20 = scalar_lea.hbm %s1507_s28, 4 }
  0x4b   : > { %672 = vmatpush.bf16.msra.mxu1 %v1222_v2  ;;  %590 = vmatpush.bf16.msra.mxu0 %v1215_v13  ;;  %v1209_v29 = vld [vmem:[#allocation7] sm:$0xff]  ;;  %s878_s10 = scalar_lea.hbm %s1968_s6, %s1204_s24  ;;  %s862_s15 = sshll.u32 %s492_s13, 4  ;;  %s863_s15 = int_to_ptr.vmem [resolvable:$true] %s862_s15 }
  0x4c   : > { %v1340_v52 = vld [vmem:[%s1932_s3] ss:$0 sm:$0xff]  ;;  %s882_s25 = sshll.u32 %s878_s10, 4  ;;  %s836_s24 = scalar_lea.sflag [#allocation4], %s1793_s29  ;;  %s1867_s25 = int_to_ptr.hbm [resolvable:$true] %s882_s25 }
  0x4d   : > { %v1341_v54 = vld [vmem:[%s1936_s7] ss:$0 sm:$0xff]  ;;  %p1509_p3 = scmp.ne.s32.totalorder %s1507_s28, %s1508_s20  ;;  %p1514_p12 = scmp.lt.s32.totalorder %s1512_s12, %s1508_s20 }
  0x4e   : > { %754 = vmatpush.bf16.msra.mxu2 %v1230_v14 }
  0x4f   : > { %673 = vmatpush.bf16.msra.mxu1 %v1221_v3  ;;  %591 = vmatpush.bf16.msra.mxu0 %v1214_v15  ;;  %p1510_p9 = pnand %p1509_p3, %p1767_p4  ;;  %p1515_p13 = por %p1514_p12, %p1513_p11 }
  0x51   : > { %p1511_p10 = pneg %p1510_p9 }
  0x52   : > { %755 = vmatpush.bf16.msra.mxu2 %v1229_v16 }
  0x53   : > { %674 = vmatpush.bf16.msra.mxu1 %v1220_v4  ;;  %592 = vmatpush.bf16.msra.mxu0 %v1213_v17  ;;  %p1516_p0 = pnand %p1515_p13, %p1511_p10 }
  0x56   : > { %756 = vmatpush.bf16.msra.mxu2 %v1228_v18 }
  0x57   : > { %675 = vmatpush.bf16.msra.mxu1 %v1219_v5  ;;  %593 = vmatpush.bf16.msra.mxu0 %v1212_v19 }
  0x5a   : > { %757 = vmatpush.bf16.msra.mxu2 %v1227_v20 }
  0x5b   : > { %676 = vmatpush.bf16.msra.mxu1 %v1218_v6  ;;  %594 = vmatpush.bf16.msra.mxu0 %v1211_v21 }
  0x5e   : > { %758 = vmatpush.bf16.msra.mxu2 %v1226_v23 }
  0x5f   : > { %677 = vmatpush.bf16.msra.mxu1 %v1217_v7  ;;  %595 = vmatpush.bf16.msra.mxu0 %v1210_v24 }
  0x62   : > { %678 = vmatmul.bf16.vlgmr.msra.gmra.mxu1 %v519_v9  ;;  %759 = vmatpush.bf16.msra.mxu2 %v1225_v28 }
  0x63   : > { %596 = vmatpush.bf16.msra.mxu0 %v1209_v29 }
  0x65   : > { %760 = vmatmul.bf16.vlgmr.msra.gmra.mxu2 %v519_v9 }
  0x66   : > { %597 = vmatmul.bf16.vlgmr.msra.gmra.mxu0 %v519_v9 }
  0xdf   : > { %v679_v25 = vpop.f32.mrf.mxu1 }
  0xe0   : > { %v680_v27 = vadd.f32 %v1339_v22, %v679_v25 }
  0xe2   : > { %v683_v30 = vadd.f32 %v680_v27, %v1820_v26 }
  0xe3   : > { %v598_v53 = vpop.f32.mrf.mxu0 }
  0xe4   : > { %768 = vxpose.xlu0.b32.start.end [1/1] (short) %v683_v30, 128  ;;  %v599_v56 = vadd.f32 %v1340_v52, %v598_v53 }
  0xe6   : > { %v766_v58 = vpack.c.bf16 %v599_v56, %v599_v56 }
  0xe7   : > { %v681_v31 = vpop.f32.mrf.mxu1 }
  0xe8   : > { %v761_v55 = vpop.f32.mrf.mxu2  ;;  %767 = vst [vmem:[%s492_s13] sm:$0xf] %v766_v58 }
  0xe9   : > { %v762_v57 = vadd.f32 %v1341_v54, %v761_v55 }
  0xeb   : > { %v765_v59 = vadd.f32 %v762_v57, %v1820_v26 }
  0xed   : > { %v833_v62 = vpack.c.bf16 %v765_v59, %v765_v59 }
 0x188   : > { %v784_v32 = vpop.trf.xlu0 }
 0x189   : > { %v800_v33 = vpack.c.bf16 %v784_v32, %v784_v32 }
 0x18b   : > { %817 = vst.msk [vmem:[%s1828_s30] sm:$0xf] %vm816_vm0, %v800_v33 }
 0x190   : > { %v785_v34 = vpop.trf.xlu0 }
 0x191   : > { %v801_v35 = vpack.c.bf16 %v785_v34, %v785_v34 }
 0x193   : > { %818 = vst.msk [vmem:[%s1828_s30 + $0x4] sm:$0xf] %vm816_vm0, %v801_v35 }
 0x198   : > { %v786_v36 = vpop.trf.xlu0 }
 0x199   : > { %v802_v37 = vpack.c.bf16 %v786_v36, %v786_v36 }
 0x19b   : > { %819 = vst.msk [vmem:[%s1828_s30 + $0x8] sm:$0xf] %vm816_vm0, %v802_v37 }
 0x1a0   : > { %v787_v38 = vpop.trf.xlu0 }
 0x1a1   : > { %v803_v39 = vpack.c.bf16 %v787_v38, %v787_v38 }
 0x1a3   : > { %820 = vst.msk [vmem:[%s1828_s30 + $0xc] sm:$0xf] %vm816_vm0, %v803_v39 }
 0x1a8   : > { %v788_v40 = vpop.trf.xlu0 }
 0x1a9   : > { %v804_v41 = vpack.c.bf16 %v788_v40, %v788_v40 }
 0x1ab   : > { %821 = vst.msk [vmem:[%s1828_s30 + $0x10] sm:$0xf] %vm816_vm0, %v804_v41 }
 0x1b0   : > { %v789_v42 = vpop.trf.xlu0 }
 0x1b1   : > { %v805_v43 = vpack.c.bf16 %v789_v42, %v789_v42 }
 0x1b3   : > { %822 = vst.msk [vmem:[%s1828_s30 + $0x14] sm:$0xf] %vm816_vm0, %v805_v43 }
 0x1b8   : > { %v790_v44 = vpop.trf.xlu0 }
 0x1b9   : > { %v806_v45 = vpack.c.bf16 %v790_v44, %v790_v44 }
 0x1bb   : > { %823 = vst.msk [vmem:[%s1828_s30 + $0x18] sm:$0xf] %vm816_vm0, %v806_v45 }
 0x1c0   : > { %v791_v46 = vpop.trf.xlu0 }
 0x1c1   : > { %v807_v47 = vpack.c.bf16 %v791_v46, %v791_v46 }
 0x1c3   : > { %824 = vst.msk [vmem:[%s1828_s30 + $0x1c] sm:$0xf] %vm816_vm0, %v807_v47 }
 0x1c8   : > { %v792_v48 = vpop.trf.xlu0 }
 0x1c9   : > { %v808_v49 = vpack.c.bf16 %v792_v48, %v792_v48 }
 0x1cb   : > { %825 = vst.msk [vmem:[%s1828_s30 + $0x20] sm:$0xf] %vm816_vm0, %v808_v49 }
 0x1d0   : > { %v793_v50 = vpop.trf.xlu0 }
 0x1d1   : > { %v809_v51 = vpack.c.bf16 %v793_v50, %v793_v50 }
 0x1d3   : > { %826 = vst.msk [vmem:[%s1828_s30 + $0x24] sm:$0xf] %vm816_vm0, %v809_v51 }
 0x1d8   : > { %v794_v60 = vpop.trf.xlu0 }
 0x1d9   : > { %v810_v61 = vpack.c.bf16 %v794_v60, %v794_v60 }
 0x1da   : > { %1519 = shalt.err (!%p1516_p0)
}
 0x1db   : > { %1249 = dma.vmem_to_hbm [thread:$0]  (%p1767_p4), %s863_s15, 64, %s865_s17, %s836_s24   ;;  %827 = vst.msk [vmem:[%s1828_s30 + $0x28] sm:$0xf] %vm816_vm0, %v810_v61  ;;  %v600_v63 = vpop.f32.mrf.mxu0  ;;  %v763_v0 = vpop.f32.mrf.mxu2 }
 0x1dc   : > { %834 = vst [vmem:[%s509_s19] sm:$0xf] %v833_v62  ;;  %s849_s27 = scalar_lea.sflag [#allocation13], %s1793_s29  ;;  %s1534_s21 = sshra.s32 %s1867_s25, 4  ;;  %s1535_s21 = int_to_ptr.hbm [resolvable:$true] %s1534_s21 }
 0x1dd   : > { %s1536_s16 = scalar_lea.hbm %s1535_s21, 4  ;;  %s1540_s28 = scalar_lea.hbm %s1968_s6, 8 }
 0x1de   : > { %p1537_p2 = scmp.ne.s32.totalorder %s1535_s21, %s1536_s16  ;;  %p1541_p1 = scmp.lt.s32.totalorder %s1535_s21, %s1968_s6 }
 0x1df   : > { %p1542_p3 = scmp.lt.s32.totalorder %s1540_s28, %s1536_s16 }
 0x1e0   : > { %p1538_p5 = pnand %p1537_p2, %p1767_p4 }
 0x1e1   : > { %p1543_p9 = por %p1542_p3, %p1541_p1 }
 0x1e2   : > { %p1539_p8 = pneg %p1538_p5 }
 0x1e4   : > { %p1544_p10 = pnand %p1543_p9, %p1539_p8 }
 0x1e6   : > { %1547 = shalt.err (!%p1544_p10)
}
 0x1e7   : > { %1250 = dma.vmem_to_hbm [thread:$0]  (%p1767_p4), %s1865_s23, 64, %s1867_s25, %s849_s27   ;;  %v795_v1 = vpop.trf.xlu0 }
 0x1e8   : > { %v811_v2 = vpack.c.bf16 %v795_v1, %v795_v1 }
 0x1ea   : > { %828 = vst.msk [vmem:[%s1828_s30 + $0x2c] sm:$0xf] %vm816_vm0, %v811_v2 }
 0x1ef   : > { %v796_v3 = vpop.trf.xlu0 }
 0x1f0   : > { %v812_v4 = vpack.c.bf16 %v796_v3, %v796_v3 }
 0x1f2   : > { %829 = vst.msk [vmem:[%s1828_s30 + $0x30] sm:$0xf] %vm816_vm0, %v812_v4 }
 0x1f7   : > { %v797_v5 = vpop.trf.xlu0 }
 0x1f8   : > { %v813_v6 = vpack.c.bf16 %v797_v5, %v797_v5 }
 0x1fa   : > { %830 = vst.msk [vmem:[%s1828_s30 + $0x34] sm:$0xf] %vm816_vm0, %v813_v6 }
 0x1ff   : > { %v798_v7 = vpop.trf.xlu0 }
 0x200   : > { %v814_v8 = vpack.c.bf16 %v798_v7, %v798_v7 }
 0x202   : > { %831 = vst.msk [vmem:[%s1828_s30 + $0x38] sm:$0xf] %vm816_vm0, %v814_v8 }
 0x207   : > { %v799_v9 = vpop.trf.xlu0 }
 0x208   : > { %v815_v10 = vpack.c.bf16 %v799_v9, %v799_v9 }
 0x20a   : > { %832 = vst.msk [vmem:[%s1828_s30 + $0x3c] sm:$0xf] %vm816_vm0, %v815_v10 }
 0x20b PF: > { %s1970_s29 = sld [smem:[#allocation20_spill]]  ;;  %p1271_p4 = pnand %p1091_p6, %p1775_p7 }
 0x20d   : > { %p1272_p11 = pneg %p1271_p4 }
 0x211   : > { %s894_s17 = sand.u32 1, %s1970_s29  }
 0x212   : > { %s895_s19 = scalar_lea.sflag [#allocation4], %s894_s17 }
 0x213   : > { %1589 = dma.done.wait (%p1272_p11), %s895_s19, 64  }
 0x214   : > { %1591 = vsyncadd (%p1272_p11), %s895_s19, 4294967232  ;;  %s916_s23 = scalar_lea.sflag [#allocation13], %s894_s17 }
 0x215   : > { %1593 = dma.done.wait (%p1272_p11), %s916_s23, 64  }
 0x216   : > { %1595 = vsyncadd (%p1272_p11), %s916_s23, 4294967232  ;;  %s34_s18 = sadd.s32 1, %s1618_s18   ;;  %s1972_s30 = sld [smem:[#allocation21_spill]] }
 0x217   : > { %p31_p12 = scmp.ge.s32.totalorder %s34_s18, 4   ;;  %s1973_s15 = sld [smem:[#allocation25_spill]] }
 0x218   : > { %s1974_s16 = sld [smem:[#allocation22_spill]]  ;;  %s1976_s13 = smov %s1602_s14 }
 0x219   : > { %s1975_s17 = sld [smem:[#allocation23_spill]]  ;;  %33 = sbr.rel (!%p31_p12) target bundleno = 16 (0x10), region = 151 }
 0x21c   : > { %s1977_s14 = smov %s1972_s30 }
 0x21e   :  { %922 = vsyncpa [#allocation3], 1 }
 0x21f   :  { %924 = vsyncpa [#allocation3 + $0x1], 1 }
 0x220   :  { %925 = vsyncpa [#allocation6], 1 }
 0x221   :  { %927 = vsyncpa [#allocation6 + $0x1], 1 }
 0x222   :  { %928 = vsyncpa [#allocation9], 1 }
 0x223   :  { %929 = vsyncpa [#allocation4], 1 }
 0x224   :  { %931 = vsyncpa [#allocation4 + $0x1], 1 }
 0x225   :  { %932 = vsyncpa [#allocation13], 1 }
 0x226   :  { %934 = vsyncpa [#allocation13 + $0x1], 1 }

</bundles_post_ra>
